<compile_context>
chip_gen: v7x
topology: tpu7x:2x2x1
jax: 0.10.0
libtpu: 0.0.40
codegen_flags: <defaults>
</compile_context>

<pallas_src>
import functools

import jax
import jax.numpy as jnp
from jax import lax
from jax.experimental import pallas as pl
from jax.experimental.pallas import tpu as pltpu


def _round_up(n, m):
    return (n + m - 1) // m * m


# ----------------------------------- Pallas kernel ------------------------------------
def _conv_row_im2col(h, w_mat, b_col, col, row_w):
    """SAME 1-D conv along flattened row positions (lane axis): im2col + one matmul.

    h:     (Cin, L)  f32   activations; lanes enumerate (row, w), rows of length row_w.
    w_mat: (Cout, K*Cin) f32, rows ordered tap-major (tap0 ch0..chC-1, tap1 ..., ...).
    b_col: (Cout, 1) f32
    col:   (1, L) int32    position-within-row (p mod row_w)
    """
    cin, _ = h.shape
    cout, kcin = w_mat.shape
    K = kcin // cin
    pad = (K - 1) // 2
    pieces = []
    for k in range(K):                       # static, unrolled
        d = k - pad                          # input offset of this tap
        if d == 0:
            pieces.append(h)
        else:
            # shifted[:, p] = h[:, p + d]; the mask keeps the conv inside its own row
            # (implements SAME zero padding and kills jnp.roll's cyclic wraparound).
            shifted = jnp.roll(h, -d, axis=1)
            valid = (col + d >= 0) & (col + d < row_w)
            pieces.append(jnp.where(valid, shifted, 0.0))
    xim = jnp.concatenate(pieces, axis=0)                          # (K*Cin, L)
    y = jnp.dot(w_mat, xim, preferred_element_type=jnp.float32)    # (Cout, L)
    return y + b_col


def convnet_kernel(x_ref, w1_ref, b1_ref, w2_ref, b2_ref, w3_ref, b3_ref, o_ref, *,
                   row_w):
    x = x_ref[...].astype(jnp.float32)                             # (C0p, L)
    L = x.shape[1]
    lane = lax.broadcasted_iota(jnp.int32, (1, L), 1)
    if (row_w & (row_w - 1)) == 0:           # power-of-two row width: cheap bit mask
        col = lane & (row_w - 1)
    else:
        col = lane % row_w                   # general case: vector int remainder
    h1 = jnp.maximum(_conv_row_im2col(x, w1_ref[...], b1_ref[...], col, row_w), 0.0)
    h2 = jnp.maximum(_conv_row_im2col(h1, w2_ref[...], b2_ref[...], col, row_w), 0.0)
    h3 = _conv_row_im2col(h2, w3_ref[...], b3_ref[...], col, row_w)        # (4, L)
    # log_softmax over the channel axis (sublanes).
    m = jnp.max(h3, axis=0, keepdims=True)
    s = h3 - m
    lse = jnp.log(jnp.sum(jnp.exp(s), axis=0, keepdims=True))
    o_ref[...] = (s - lse).astype(o_ref.dtype)


# ----------------------------------- host wrapper -------------------------------------
def _pack_conv(w_torch, b_torch, cin_pad, cout_pad):
    """PyTorch Conv2d weight (Cout, Cin, 1, K) + bias (Cout,) -> im2col matmul weight
    (cout_pad, K*cin_pad) with tap-major rows, channel dims zero-padded to the requested
    (multiple-of-8) sizes, plus a bias column (cout_pad, 1)."""
    cout, cin, _, K = w_torch.shape
    w = jnp.transpose(w_torch[:, :, 0, :], (0, 2, 1))              # (Cout, K, Cin)
    w = jnp.pad(w, ((0, cout_pad - cout), (0, 0), (0, cin_pad - cin)))
    b = jnp.pad(b_torch, (0, cout_pad - cout)).reshape(-1, 1)
    return w.reshape(cout_pad, K * cin_pad), b


def convnet_forward(x, params, rows_per_block=256):
    """x: (N, 20, H, W) float32 NCHW; params: PyTorch-layout ((w, b),) * 3.
    Returns (N, 4, H, W) float32 log-probabilities."""
    (w1, b1), (w2, b2), (w3, b3) = params
    N, cin, H, W = x.shape

    # Channel counts padded to multiples of 8 (dummy channels carry zero weights/bias,
    # stay exactly zero through ReLU, and contribute nothing downstream).
    c0p = _round_up(cin, 8)             # 20 -> 24
    c1p = _round_up(w1.shape[0], 8)     # 25 -> 32
    c2p = _round_up(w2.shape[0], 8)     #  7 ->  8
    c3 = w3.shape[0]                    #  4  (final output stored unpadded)
    wm1, bc1 = _pack_conv(w1, b1, c0p, c1p)
    wm2, bc2 = _pack_conv(w2, b2, c1p, c2p)
    wm3, bc3 = _pack_conv(w3, b3, c2p, c3)

    # One conv "row" = one (n, h) pair; all kernels have height 1.
    NR = N * H
    R = min(rows_per_block, _round_up(NR, 8))     # rows per grid step (R*W % 128 == 0)
    NRp = _round_up(NR, R)
    L = R * W

    # NCHW -> channel-major (C, N*H*W): major-dim permutation only (H, W stay minor).
    xr = jnp.transpose(x, (1, 0, 2, 3)).reshape(cin, NR * W)
    xr = jnp.pad(xr, ((0, c0p - cin), (0, (NRp - NR) * W)))

    kernel = functools.partial(convnet_kernel, row_w=W)
    out = pl.pallas_call(
        kernel,
        out_shape=jax.ShapeDtypeStruct((c3, NRp * W), jnp.float32),
        grid=(NRp // R,),
        in_specs=[
            pl.BlockSpec((c0p, L), lambda i: (0, i)),
            pl.BlockSpec(wm1.shape, lambda i: (0, 0)),
            pl.BlockSpec(bc1.shape, lambda i: (0, 0)),
            pl.BlockSpec(wm2.shape, lambda i: (0, 0)),
            pl.BlockSpec(bc2.shape, lambda i: (0, 0)),
            pl.BlockSpec(wm3.shape, lambda i: (0, 0)),
            pl.BlockSpec(bc3.shape, lambda i: (0, 0)),
        ],
        out_specs=pl.BlockSpec((c3, L), lambda i: (0, i)),
        compiler_params=pltpu.CompilerParams(dimension_semantics=("parallel",)),
    )(xr, wm1, bc1, wm2, bc2, wm3, bc3)

    # (4, NRp*W) -> drop row padding -> NCHW (N, 4, H, W); again a major-dim permute.
    out = out[:, : NR * W].reshape(c3, N, H, W)
    return jnp.transpose(out, (1, 0, 2, 3))


# ------------------------- reference (pure JAX, for checking) --------------------------
def _ref_conv(x, w, b, pad_w):
    y = lax.conv_general_dilated(
        x, w, window_strides=(1, 1), padding=((0, 0), (pad_w, pad_w)),
        dimension_numbers=("NCHW", "OIHW", "NCHW"))
    return y + b[None, :, None, None]


def ref_forward(x, params):
    (w1, b1), (w2, b2), (w3, b3) = params
    out = jax.nn.relu(_ref_conv(x, w1, b1, 1))
    out = jax.nn.relu(_ref_conv(out, w2, b2, 3))
    return jax.nn.log_softmax(_ref_conv(out, w3, b3, 7), axis=1)


if __name__ == "__main__":
    N, Cin, H, W = 2, 20, 6, 16   # '1hot' input mode -> 20 input channels

    key = jax.random.PRNGKey(0)
    k1, k2, k3, k4, k5, k6, kx = jax.random.split(key, 7)

    # Deterministic synthetic parameters in PyTorch Conv2d layout (Cout, Cin, kH, kW).
    params = (
        (jax.random.normal(k1, (25, 20, 1, 3), jnp.float32) * 0.2,
         jax.random.normal(k2, (25,), jnp.float32) * 0.1),
        (jax.random.normal(k3, (7, 25, 1, 7), jnp.float32) * 0.2,
         jax.random.normal(k4, (7,), jnp.float32) * 0.1),
        (jax.random.normal(k5, (4, 7, 1, 15), jnp.float32) * 0.2,
         jax.random.normal(k6, (4,), jnp.float32) * 0.1),
    )
    x = jax.random.normal(kx, (N, Cin, H, W), jnp.float32)

    out = jax.block_until_ready(convnet_forward(x, params))
    ref = jax.block_until_ready(ref_forward(x, params))

    assert out.shape == (N, 4, H, W)
    err = float(jnp.max(jnp.abs(out - ref)))
    assert err < 5e-4, f"max abs err {err}"

    print("KERNEL_OK")
</pallas_src>

<mosaic_0001>
module attributes {stable_mosaic.version = 11 : i64} {
  func.func @convnet_kernel(%arg0: i32, %arg1: memref<24x256xf32, #tpu.memory_space<vmem>>, %arg2: memref<32x72xf32, #tpu.memory_space<vmem>>, %arg3: memref<32x1xf32, #tpu.memory_space<vmem>>, %arg4: memref<8x224xf32, #tpu.memory_space<vmem>>, %arg5: memref<8x1xf32, #tpu.memory_space<vmem>>, %arg6: memref<4x120xf32, #tpu.memory_space<vmem>>, %arg7: memref<4x1xf32, #tpu.memory_space<vmem>>, %arg8: memref<4x256xf32, #tpu.memory_space<vmem>>) attributes {dimension_semantics = [#tpu.dimension_semantics<parallel>], iteration_bounds = array<i64: 1>, scalar_prefetch = 0 : i64, scratch_operands = 0 : i64, tpu.core_type = #tpu.core_type<tc>, window_params = [{transform_indices = @transform_0, window_bounds = array<i64: 24, 256>}, {pipeline_mode = #tpu.pipeline_mode<synchronous>, transform_indices = @transform_1, window_bounds = array<i64: 32, 72>}, {pipeline_mode = #tpu.pipeline_mode<synchronous>, transform_indices = @transform_2, window_bounds = array<i64: 32, 1>}, {pipeline_mode = #tpu.pipeline_mode<synchronous>, transform_indices = @transform_3, window_bounds = array<i64: 8, 224>}, {pipeline_mode = #tpu.pipeline_mode<synchronous>, transform_indices = @transform_4, window_bounds = array<i64: 8, 1>}, {pipeline_mode = #tpu.pipeline_mode<synchronous>, transform_indices = @transform_5, window_bounds = array<i64: 4, 120>}, {pipeline_mode = #tpu.pipeline_mode<synchronous>, transform_indices = @transform_6, window_bounds = array<i64: 4, 1>}, {transform_indices = @transform_7, window_bounds = array<i64: 4, 256>}]} {
    %c0 = arith.constant 0 : index
    %c0_0 = arith.constant 0 : index
    %0 = vector.load %arg1[%c0, %c0_0] : memref<24x256xf32, #tpu.memory_space<vmem>>, vector<24x256xf32>
    %1 = tpu.iota {dimensions = array<i32: 1>} : vector<1x256xi32>
    %c15_i32 = arith.constant 15 : i32
    %2 = vector.broadcast %c15_i32 : i32 to vector<1x256xi32>
    %3 = arith.andi %1, %2 : vector<1x256xi32>
    %c0_1 = arith.constant 0 : index
    %c0_2 = arith.constant 0 : index
    %4 = vector.load %arg2[%c0_1, %c0_2] : memref<32x72xf32, #tpu.memory_space<vmem>>, vector<32x72xf32>
    %c0_3 = arith.constant 0 : index
    %c0_4 = arith.constant 0 : index
    %5 = vector.load %arg3[%c0_3, %c0_4] : memref<32x1xf32, #tpu.memory_space<vmem>>, vector<32x1xf32>
    %6 = vector.extract_strided_slice %0 {offsets = [0, 255], sizes = [24, 1], strides = [1, 1]} : vector<24x256xf32> to vector<24x1xf32>
    %7 = vector.extract_strided_slice %0 {offsets = [0, 0], sizes = [24, 255], strides = [1, 1]} : vector<24x256xf32> to vector<24x255xf32>
    %8 = tpu.concatenate %6, %7 in 1 : vector<24x1xf32>, vector<24x255xf32> -> vector<24x256xf32>
    %c-1_i32 = arith.constant -1 : i32
    %9 = vector.broadcast %c-1_i32 : i32 to vector<1x256xi32>
    %10 = arith.addi %3, %9 : vector<1x256xi32>
    %c0_i32 = arith.constant 0 : i32
    %11 = vector.broadcast %c0_i32 : i32 to vector<1x256xi32>
    %12 = arith.cmpi sge, %10, %11 : vector<1x256xi32>
    %c-1_i32_5 = arith.constant -1 : i32
    %13 = vector.broadcast %c-1_i32_5 : i32 to vector<1x256xi32>
    %14 = arith.addi %3, %13 : vector<1x256xi32>
    %c16_i32 = arith.constant 16 : i32
    %15 = vector.broadcast %c16_i32 : i32 to vector<1x256xi32>
    %16 = arith.cmpi slt, %14, %15 : vector<1x256xi32>
    %17 = arith.andi %12, %16 : vector<1x256xi1>
    %cst = arith.constant 0.000000e+00 : f32
    %18 = vector.shape_cast %17 : vector<1x256xi1> to vector<1x256xi1>
    %19 = vector.broadcast %18 : vector<1x256xi1> to vector<24x256xi1>
    %20 = vector.broadcast %cst : f32 to vector<24x256xf32>
    %21 = arith.select %19, %8, %20 : vector<24x256xi1>, vector<24x256xf32>
    %22 = vector.extract_strided_slice %0 {offsets = [0, 1], sizes = [24, 255], strides = [1, 1]} : vector<24x256xf32> to vector<24x255xf32>
    %23 = vector.extract_strided_slice %0 {offsets = [0, 0], sizes = [24, 1], strides = [1, 1]} : vector<24x256xf32> to vector<24x1xf32>
    %24 = tpu.concatenate %22, %23 in 1 : vector<24x255xf32>, vector<24x1xf32> -> vector<24x256xf32>
    %c1_i32 = arith.constant 1 : i32
    %25 = vector.broadcast %c1_i32 : i32 to vector<1x256xi32>
    %26 = arith.addi %3, %25 : vector<1x256xi32>
    %c0_i32_6 = arith.constant 0 : i32
    %27 = vector.broadcast %c0_i32_6 : i32 to vector<1x256xi32>
    %28 = arith.cmpi sge, %26, %27 : vector<1x256xi32>
    %c1_i32_7 = arith.constant 1 : i32
    %29 = vector.broadcast %c1_i32_7 : i32 to vector<1x256xi32>
    %30 = arith.addi %3, %29 : vector<1x256xi32>
    %c16_i32_8 = arith.constant 16 : i32
    %31 = vector.broadcast %c16_i32_8 : i32 to vector<1x256xi32>
    %32 = arith.cmpi slt, %30, %31 : vector<1x256xi32>
    %33 = arith.andi %28, %32 : vector<1x256xi1>
    %cst_9 = arith.constant 0.000000e+00 : f32
    %34 = vector.shape_cast %33 : vector<1x256xi1> to vector<1x256xi1>
    %35 = vector.broadcast %34 : vector<1x256xi1> to vector<24x256xi1>
    %36 = vector.broadcast %cst_9 : f32 to vector<24x256xf32>
    %37 = arith.select %35, %24, %36 : vector<24x256xi1>, vector<24x256xf32>
    %38 = tpu.concatenate %21, %0, %37 in 0 : vector<24x256xf32>, vector<24x256xf32>, vector<24x256xf32> -> vector<72x256xf32>
    %cst_10 = arith.constant dense<0.000000e+00> : vector<32x256xf32>
    %39 = tpu.matmul %4, %38, %cst_10 {dimension_numbers = #tpu.dot_dimension_numbers<[1], [0], [0], [1], [0, 0, 1, 1], [], []>} : vector<32x72xf32>, vector<72x256xf32>, vector<32x256xf32> -> vector<32x256xf32>
    %40 = vector.broadcast %5 : vector<32x1xf32> to vector<32x256xf32>
    %41 = arith.addf %39, %40 : vector<32x256xf32>
    %cst_11 = arith.constant 0.000000e+00 : f32
    %42 = vector.broadcast %cst_11 : f32 to vector<32x256xf32>
    %43 = arith.maximumf %41, %42 : vector<32x256xf32>
    %c0_12 = arith.constant 0 : index
    %c0_13 = arith.constant 0 : index
    %44 = vector.load %arg4[%c0_12, %c0_13] : memref<8x224xf32, #tpu.memory_space<vmem>>, vector<8x224xf32>
    %c0_14 = arith.constant 0 : index
    %c0_15 = arith.constant 0 : index
    %45 = vector.load %arg5[%c0_14, %c0_15] : memref<8x1xf32, #tpu.memory_space<vmem>>, vector<8x1xf32>
    %46 = vector.extract_strided_slice %43 {offsets = [0, 253], sizes = [32, 3], strides = [1, 1]} : vector<32x256xf32> to vector<32x3xf32>
    %47 = vector.extract_strided_slice %43 {offsets = [0, 0], sizes = [32, 253], strides = [1, 1]} : vector<32x256xf32> to vector<32x253xf32>
    %48 = tpu.concatenate %46, %47 in 1 : vector<32x3xf32>, vector<32x253xf32> -> vector<32x256xf32>
    %c-3_i32 = arith.constant -3 : i32
    %49 = vector.broadcast %c-3_i32 : i32 to vector<1x256xi32>
    %50 = arith.addi %3, %49 : vector<1x256xi32>
    %c0_i32_16 = arith.constant 0 : i32
    %51 = vector.broadcast %c0_i32_16 : i32 to vector<1x256xi32>
    %52 = arith.cmpi sge, %50, %51 : vector<1x256xi32>
    %c-3_i32_17 = arith.constant -3 : i32
    %53 = vector.broadcast %c-3_i32_17 : i32 to vector<1x256xi32>
    %54 = arith.addi %3, %53 : vector<1x256xi32>
    %c16_i32_18 = arith.constant 16 : i32
    %55 = vector.broadcast %c16_i32_18 : i32 to vector<1x256xi32>
    %56 = arith.cmpi slt, %54, %55 : vector<1x256xi32>
    %57 = arith.andi %52, %56 : vector<1x256xi1>
    %cst_19 = arith.constant 0.000000e+00 : f32
    %58 = vector.shape_cast %57 : vector<1x256xi1> to vector<1x256xi1>
    %59 = vector.broadcast %58 : vector<1x256xi1> to vector<32x256xi1>
    %60 = vector.broadcast %cst_19 : f32 to vector<32x256xf32>
    %61 = arith.select %59, %48, %60 : vector<32x256xi1>, vector<32x256xf32>
    %62 = vector.extract_strided_slice %43 {offsets = [0, 254], sizes = [32, 2], strides = [1, 1]} : vector<32x256xf32> to vector<32x2xf32>
    %63 = vector.extract_strided_slice %43 {offsets = [0, 0], sizes = [32, 254], strides = [1, 1]} : vector<32x256xf32> to vector<32x254xf32>
    %64 = tpu.concatenate %62, %63 in 1 : vector<32x2xf32>, vector<32x254xf32> -> vector<32x256xf32>
    %c-2_i32 = arith.constant -2 : i32
    %65 = vector.broadcast %c-2_i32 : i32 to vector<1x256xi32>
    %66 = arith.addi %3, %65 : vector<1x256xi32>
    %c0_i32_20 = arith.constant 0 : i32
    %67 = vector.broadcast %c0_i32_20 : i32 to vector<1x256xi32>
    %68 = arith.cmpi sge, %66, %67 : vector<1x256xi32>
    %c-2_i32_21 = arith.constant -2 : i32
    %69 = vector.broadcast %c-2_i32_21 : i32 to vector<1x256xi32>
    %70 = arith.addi %3, %69 : vector<1x256xi32>
    %c16_i32_22 = arith.constant 16 : i32
    %71 = vector.broadcast %c16_i32_22 : i32 to vector<1x256xi32>
    %72 = arith.cmpi slt, %70, %71 : vector<1x256xi32>
    %73 = arith.andi %68, %72 : vector<1x256xi1>
    %cst_23 = arith.constant 0.000000e+00 : f32
    %74 = vector.shape_cast %73 : vector<1x256xi1> to vector<1x256xi1>
    %75 = vector.broadcast %74 : vector<1x256xi1> to vector<32x256xi1>
    %76 = vector.broadcast %cst_23 : f32 to vector<32x256xf32>
    %77 = arith.select %75, %64, %76 : vector<32x256xi1>, vector<32x256xf32>
    %78 = vector.extract_strided_slice %43 {offsets = [0, 255], sizes = [32, 1], strides = [1, 1]} : vector<32x256xf32> to vector<32x1xf32>
    %79 = vector.extract_strided_slice %43 {offsets = [0, 0], sizes = [32, 255], strides = [1, 1]} : vector<32x256xf32> to vector<32x255xf32>
    %80 = tpu.concatenate %78, %79 in 1 : vector<32x1xf32>, vector<32x255xf32> -> vector<32x256xf32>
    %c-1_i32_24 = arith.constant -1 : i32
    %81 = vector.broadcast %c-1_i32_24 : i32 to vector<1x256xi32>
    %82 = arith.addi %3, %81 : vector<1x256xi32>
    %c0_i32_25 = arith.constant 0 : i32
    %83 = vector.broadcast %c0_i32_25 : i32 to vector<1x256xi32>
    %84 = arith.cmpi sge, %82, %83 : vector<1x256xi32>
    %c-1_i32_26 = arith.constant -1 : i32
    %85 = vector.broadcast %c-1_i32_26 : i32 to vector<1x256xi32>
    %86 = arith.addi %3, %85 : vector<1x256xi32>
    %c16_i32_27 = arith.constant 16 : i32
    %87 = vector.broadcast %c16_i32_27 : i32 to vector<1x256xi32>
    %88 = arith.cmpi slt, %86, %87 : vector<1x256xi32>
    %89 = arith.andi %84, %88 : vector<1x256xi1>
    %cst_28 = arith.constant 0.000000e+00 : f32
    %90 = vector.shape_cast %89 : vector<1x256xi1> to vector<1x256xi1>
    %91 = vector.broadcast %90 : vector<1x256xi1> to vector<32x256xi1>
    %92 = vector.broadcast %cst_28 : f32 to vector<32x256xf32>
    %93 = arith.select %91, %80, %92 : vector<32x256xi1>, vector<32x256xf32>
    %94 = vector.extract_strided_slice %43 {offsets = [0, 1], sizes = [32, 255], strides = [1, 1]} : vector<32x256xf32> to vector<32x255xf32>
    %95 = vector.extract_strided_slice %43 {offsets = [0, 0], sizes = [32, 1], strides = [1, 1]} : vector<32x256xf32> to vector<32x1xf32>
    %96 = tpu.concatenate %94, %95 in 1 : vector<32x255xf32>, vector<32x1xf32> -> vector<32x256xf32>
    %c1_i32_29 = arith.constant 1 : i32
    %97 = vector.broadcast %c1_i32_29 : i32 to vector<1x256xi32>
    %98 = arith.addi %3, %97 : vector<1x256xi32>
    %c0_i32_30 = arith.constant 0 : i32
    %99 = vector.broadcast %c0_i32_30 : i32 to vector<1x256xi32>
    %100 = arith.cmpi sge, %98, %99 : vector<1x256xi32>
    %c1_i32_31 = arith.constant 1 : i32
    %101 = vector.broadcast %c1_i32_31 : i32 to vector<1x256xi32>
    %102 = arith.addi %3, %101 : vector<1x256xi32>
    %c16_i32_32 = arith.constant 16 : i32
    %103 = vector.broadcast %c16_i32_32 : i32 to vector<1x256xi32>
    %104 = arith.cmpi slt, %102, %103 : vector<1x256xi32>
    %105 = arith.andi %100, %104 : vector<1x256xi1>
    %cst_33 = arith.constant 0.000000e+00 : f32
    %106 = vector.shape_cast %105 : vector<1x256xi1> to vector<1x256xi1>
    %107 = vector.broadcast %106 : vector<1x256xi1> to vector<32x256xi1>
    %108 = vector.broadcast %cst_33 : f32 to vector<32x256xf32>
    %109 = arith.select %107, %96, %108 : vector<32x256xi1>, vector<32x256xf32>
    %110 = vector.extract_strided_slice %43 {offsets = [0, 2], sizes = [32, 254], strides = [1, 1]} : vector<32x256xf32> to vector<32x254xf32>
    %111 = vector.extract_strided_slice %43 {offsets = [0, 0], sizes = [32, 2], strides = [1, 1]} : vector<32x256xf32> to vector<32x2xf32>
    %112 = tpu.concatenate %110, %111 in 1 : vector<32x254xf32>, vector<32x2xf32> -> vector<32x256xf32>
    %c2_i32 = arith.constant 2 : i32
    %113 = vector.broadcast %c2_i32 : i32 to vector<1x256xi32>
    %114 = arith.addi %3, %113 : vector<1x256xi32>
    %c0_i32_34 = arith.constant 0 : i32
    %115 = vector.broadcast %c0_i32_34 : i32 to vector<1x256xi32>
    %116 = arith.cmpi sge, %114, %115 : vector<1x256xi32>
    %c2_i32_35 = arith.constant 2 : i32
    %117 = vector.broadcast %c2_i32_35 : i32 to vector<1x256xi32>
    %118 = arith.addi %3, %117 : vector<1x256xi32>
    %c16_i32_36 = arith.constant 16 : i32
    %119 = vector.broadcast %c16_i32_36 : i32 to vector<1x256xi32>
    %120 = arith.cmpi slt, %118, %119 : vector<1x256xi32>
    %121 = arith.andi %116, %120 : vector<1x256xi1>
    %cst_37 = arith.constant 0.000000e+00 : f32
    %122 = vector.shape_cast %121 : vector<1x256xi1> to vector<1x256xi1>
    %123 = vector.broadcast %122 : vector<1x256xi1> to vector<32x256xi1>
    %124 = vector.broadcast %cst_37 : f32 to vector<32x256xf32>
    %125 = arith.select %123, %112, %124 : vector<32x256xi1>, vector<32x256xf32>
    %126 = vector.extract_strided_slice %43 {offsets = [0, 3], sizes = [32, 253], strides = [1, 1]} : vector<32x256xf32> to vector<32x253xf32>
    %127 = vector.extract_strided_slice %43 {offsets = [0, 0], sizes = [32, 3], strides = [1, 1]} : vector<32x256xf32> to vector<32x3xf32>
    %128 = tpu.concatenate %126, %127 in 1 : vector<32x253xf32>, vector<32x3xf32> -> vector<32x256xf32>
    %c3_i32 = arith.constant 3 : i32
    %129 = vector.broadcast %c3_i32 : i32 to vector<1x256xi32>
    %130 = arith.addi %3, %129 : vector<1x256xi32>
    %c0_i32_38 = arith.constant 0 : i32
    %131 = vector.broadcast %c0_i32_38 : i32 to vector<1x256xi32>
    %132 = arith.cmpi sge, %130, %131 : vector<1x256xi32>
    %c3_i32_39 = arith.constant 3 : i32
    %133 = vector.broadcast %c3_i32_39 : i32 to vector<1x256xi32>
    %134 = arith.addi %3, %133 : vector<1x256xi32>
    %c16_i32_40 = arith.constant 16 : i32
    %135 = vector.broadcast %c16_i32_40 : i32 to vector<1x256xi32>
    %136 = arith.cmpi slt, %134, %135 : vector<1x256xi32>
    %137 = arith.andi %132, %136 : vector<1x256xi1>
    %cst_41 = arith.constant 0.000000e+00 : f32
    %138 = vector.shape_cast %137 : vector<1x256xi1> to vector<1x256xi1>
    %139 = vector.broadcast %138 : vector<1x256xi1> to vector<32x256xi1>
    %140 = vector.broadcast %cst_41 : f32 to vector<32x256xf32>
    %141 = arith.select %139, %128, %140 : vector<32x256xi1>, vector<32x256xf32>
    %142 = tpu.concatenate %61, %77, %93, %43, %109, %125, %141 in 0 : vector<32x256xf32>, vector<32x256xf32>, vector<32x256xf32>, vector<32x256xf32>, vector<32x256xf32>, vector<32x256xf32>, vector<32x256xf32> -> vector<224x256xf32>
    %cst_42 = arith.constant dense<0.000000e+00> : vector<8x256xf32>
    %143 = tpu.matmul %44, %142, %cst_42 {dimension_numbers = #tpu.dot_dimension_numbers<[1], [0], [0], [1], [0, 0, 1, 1], [], []>} : vector<8x224xf32>, vector<224x256xf32>, vector<8x256xf32> -> vector<8x256xf32>
    %144 = vector.broadcast %45 : vector<8x1xf32> to vector<8x256xf32>
    %145 = arith.addf %143, %144 : vector<8x256xf32>
    %cst_43 = arith.constant 0.000000e+00 : f32
    %146 = vector.broadcast %cst_43 : f32 to vector<8x256xf32>
    %147 = arith.maximumf %145, %146 : vector<8x256xf32>
    %c0_44 = arith.constant 0 : index
    %c0_45 = arith.constant 0 : index
    %148 = vector.load %arg6[%c0_44, %c0_45] : memref<4x120xf32, #tpu.memory_space<vmem>>, vector<4x120xf32>
    %c0_46 = arith.constant 0 : index
    %c0_47 = arith.constant 0 : index
    %149 = vector.load %arg7[%c0_46, %c0_47] : memref<4x1xf32, #tpu.memory_space<vmem>>, vector<4x1xf32>
    %150 = vector.extract_strided_slice %147 {offsets = [0, 249], sizes = [8, 7], strides = [1, 1]} : vector<8x256xf32> to vector<8x7xf32>
    %151 = vector.extract_strided_slice %147 {offsets = [0, 0], sizes = [8, 249], strides = [1, 1]} : vector<8x256xf32> to vector<8x249xf32>
    %152 = tpu.concatenate %150, %151 in 1 : vector<8x7xf32>, vector<8x249xf32> -> vector<8x256xf32>
    %c-7_i32 = arith.constant -7 : i32
    %153 = vector.broadcast %c-7_i32 : i32 to vector<1x256xi32>
    %154 = arith.addi %3, %153 : vector<1x256xi32>
    %c0_i32_48 = arith.constant 0 : i32
    %155 = vector.broadcast %c0_i32_48 : i32 to vector<1x256xi32>
    %156 = arith.cmpi sge, %154, %155 : vector<1x256xi32>
    %c-7_i32_49 = arith.constant -7 : i32
    %157 = vector.broadcast %c-7_i32_49 : i32 to vector<1x256xi32>
    %158 = arith.addi %3, %157 : vector<1x256xi32>
    %c16_i32_50 = arith.constant 16 : i32
    %159 = vector.broadcast %c16_i32_50 : i32 to vector<1x256xi32>
    %160 = arith.cmpi slt, %158, %159 : vector<1x256xi32>
    %161 = arith.andi %156, %160 : vector<1x256xi1>
    %cst_51 = arith.constant 0.000000e+00 : f32
    %162 = vector.shape_cast %161 : vector<1x256xi1> to vector<1x256xi1>
    %163 = vector.broadcast %162 : vector<1x256xi1> to vector<8x256xi1>
    %164 = vector.broadcast %cst_51 : f32 to vector<8x256xf32>
    %165 = arith.select %163, %152, %164 : vector<8x256xi1>, vector<8x256xf32>
    %166 = vector.extract_strided_slice %147 {offsets = [0, 250], sizes = [8, 6], strides = [1, 1]} : vector<8x256xf32> to vector<8x6xf32>
    %167 = vector.extract_strided_slice %147 {offsets = [0, 0], sizes = [8, 250], strides = [1, 1]} : vector<8x256xf32> to vector<8x250xf32>
    %168 = tpu.concatenate %166, %167 in 1 : vector<8x6xf32>, vector<8x250xf32> -> vector<8x256xf32>
    %c-6_i32 = arith.constant -6 : i32
    %169 = vector.broadcast %c-6_i32 : i32 to vector<1x256xi32>
    %170 = arith.addi %3, %169 : vector<1x256xi32>
    %c0_i32_52 = arith.constant 0 : i32
    %171 = vector.broadcast %c0_i32_52 : i32 to vector<1x256xi32>
    %172 = arith.cmpi sge, %170, %171 : vector<1x256xi32>
    %c-6_i32_53 = arith.constant -6 : i32
    %173 = vector.broadcast %c-6_i32_53 : i32 to vector<1x256xi32>
    %174 = arith.addi %3, %173 : vector<1x256xi32>
    %c16_i32_54 = arith.constant 16 : i32
    %175 = vector.broadcast %c16_i32_54 : i32 to vector<1x256xi32>
    %176 = arith.cmpi slt, %174, %175 : vector<1x256xi32>
    %177 = arith.andi %172, %176 : vector<1x256xi1>
    %cst_55 = arith.constant 0.000000e+00 : f32
    %178 = vector.shape_cast %177 : vector<1x256xi1> to vector<1x256xi1>
    %179 = vector.broadcast %178 : vector<1x256xi1> to vector<8x256xi1>
    %180 = vector.broadcast %cst_55 : f32 to vector<8x256xf32>
    %181 = arith.select %179, %168, %180 : vector<8x256xi1>, vector<8x256xf32>
    %182 = vector.extract_strided_slice %147 {offsets = [0, 251], sizes = [8, 5], strides = [1, 1]} : vector<8x256xf32> to vector<8x5xf32>
    %183 = vector.extract_strided_slice %147 {offsets = [0, 0], sizes = [8, 251], strides = [1, 1]} : vector<8x256xf32> to vector<8x251xf32>
    %184 = tpu.concatenate %182, %183 in 1 : vector<8x5xf32>, vector<8x251xf32> -> vector<8x256xf32>
    %c-5_i32 = arith.constant -5 : i32
    %185 = vector.broadcast %c-5_i32 : i32 to vector<1x256xi32>
    %186 = arith.addi %3, %185 : vector<1x256xi32>
    %c0_i32_56 = arith.constant 0 : i32
    %187 = vector.broadcast %c0_i32_56 : i32 to vector<1x256xi32>
    %188 = arith.cmpi sge, %186, %187 : vector<1x256xi32>
    %c-5_i32_57 = arith.constant -5 : i32
    %189 = vector.broadcast %c-5_i32_57 : i32 to vector<1x256xi32>
    %190 = arith.addi %3, %189 : vector<1x256xi32>
    %c16_i32_58 = arith.constant 16 : i32
    %191 = vector.broadcast %c16_i32_58 : i32 to vector<1x256xi32>
    %192 = arith.cmpi slt, %190, %191 : vector<1x256xi32>
    %193 = arith.andi %188, %192 : vector<1x256xi1>
    %cst_59 = arith.constant 0.000000e+00 : f32
    %194 = vector.shape_cast %193 : vector<1x256xi1> to vector<1x256xi1>
    %195 = vector.broadcast %194 : vector<1x256xi1> to vector<8x256xi1>
    %196 = vector.broadcast %cst_59 : f32 to vector<8x256xf32>
    %197 = arith.select %195, %184, %196 : vector<8x256xi1>, vector<8x256xf32>
    %198 = vector.extract_strided_slice %147 {offsets = [0, 252], sizes = [8, 4], strides = [1, 1]} : vector<8x256xf32> to vector<8x4xf32>
    %199 = vector.extract_strided_slice %147 {offsets = [0, 0], sizes = [8, 252], strides = [1, 1]} : vector<8x256xf32> to vector<8x252xf32>
    %200 = tpu.concatenate %198, %199 in 1 : vector<8x4xf32>, vector<8x252xf32> -> vector<8x256xf32>
    %c-4_i32 = arith.constant -4 : i32
    %201 = vector.broadcast %c-4_i32 : i32 to vector<1x256xi32>
    %202 = arith.addi %3, %201 : vector<1x256xi32>
    %c0_i32_60 = arith.constant 0 : i32
    %203 = vector.broadcast %c0_i32_60 : i32 to vector<1x256xi32>
    %204 = arith.cmpi sge, %202, %203 : vector<1x256xi32>
    %c-4_i32_61 = arith.constant -4 : i32
    %205 = vector.broadcast %c-4_i32_61 : i32 to vector<1x256xi32>
    %206 = arith.addi %3, %205 : vector<1x256xi32>
    %c16_i32_62 = arith.constant 16 : i32
    %207 = vector.broadcast %c16_i32_62 : i32 to vector<1x256xi32>
    %208 = arith.cmpi slt, %206, %207 : vector<1x256xi32>
    %209 = arith.andi %204, %208 : vector<1x256xi1>
    %cst_63 = arith.constant 0.000000e+00 : f32
    %210 = vector.shape_cast %209 : vector<1x256xi1> to vector<1x256xi1>
    %211 = vector.broadcast %210 : vector<1x256xi1> to vector<8x256xi1>
    %212 = vector.broadcast %cst_63 : f32 to vector<8x256xf32>
    %213 = arith.select %211, %200, %212 : vector<8x256xi1>, vector<8x256xf32>
    %214 = vector.extract_strided_slice %147 {offsets = [0, 253], sizes = [8, 3], strides = [1, 1]} : vector<8x256xf32> to vector<8x3xf32>
    %215 = vector.extract_strided_slice %147 {offsets = [0, 0], sizes = [8, 253], strides = [1, 1]} : vector<8x256xf32> to vector<8x253xf32>
    %216 = tpu.concatenate %214, %215 in 1 : vector<8x3xf32>, vector<8x253xf32> -> vector<8x256xf32>
    %c-3_i32_64 = arith.constant -3 : i32
    %217 = vector.broadcast %c-3_i32_64 : i32 to vector<1x256xi32>
    %218 = arith.addi %3, %217 : vector<1x256xi32>
    %c0_i32_65 = arith.constant 0 : i32
    %219 = vector.broadcast %c0_i32_65 : i32 to vector<1x256xi32>
    %220 = arith.cmpi sge, %218, %219 : vector<1x256xi32>
    %c-3_i32_66 = arith.constant -3 : i32
    %221 = vector.broadcast %c-3_i32_66 : i32 to vector<1x256xi32>
    %222 = arith.addi %3, %221 : vector<1x256xi32>
    %c16_i32_67 = arith.constant 16 : i32
    %223 = vector.broadcast %c16_i32_67 : i32 to vector<1x256xi32>
    %224 = arith.cmpi slt, %222, %223 : vector<1x256xi32>
    %225 = arith.andi %220, %224 : vector<1x256xi1>
    %cst_68 = arith.constant 0.000000e+00 : f32
    %226 = vector.shape_cast %225 : vector<1x256xi1> to vector<1x256xi1>
    %227 = vector.broadcast %226 : vector<1x256xi1> to vector<8x256xi1>
    %228 = vector.broadcast %cst_68 : f32 to vector<8x256xf32>
    %229 = arith.select %227, %216, %228 : vector<8x256xi1>, vector<8x256xf32>
    %230 = vector.extract_strided_slice %147 {offsets = [0, 254], sizes = [8, 2], strides = [1, 1]} : vector<8x256xf32> to vector<8x2xf32>
    %231 = vector.extract_strided_slice %147 {offsets = [0, 0], sizes = [8, 254], strides = [1, 1]} : vector<8x256xf32> to vector<8x254xf32>
    %232 = tpu.concatenate %230, %231 in 1 : vector<8x2xf32>, vector<8x254xf32> -> vector<8x256xf32>
    %c-2_i32_69 = arith.constant -2 : i32
    %233 = vector.broadcast %c-2_i32_69 : i32 to vector<1x256xi32>
    %234 = arith.addi %3, %233 : vector<1x256xi32>
    %c0_i32_70 = arith.constant 0 : i32
    %235 = vector.broadcast %c0_i32_70 : i32 to vector<1x256xi32>
    %236 = arith.cmpi sge, %234, %235 : vector<1x256xi32>
    %c-2_i32_71 = arith.constant -2 : i32
    %237 = vector.broadcast %c-2_i32_71 : i32 to vector<1x256xi32>
    %238 = arith.addi %3, %237 : vector<1x256xi32>
    %c16_i32_72 = arith.constant 16 : i32
    %239 = vector.broadcast %c16_i32_72 : i32 to vector<1x256xi32>
    %240 = arith.cmpi slt, %238, %239 : vector<1x256xi32>
    %241 = arith.andi %236, %240 : vector<1x256xi1>
    %cst_73 = arith.constant 0.000000e+00 : f32
    %242 = vector.shape_cast %241 : vector<1x256xi1> to vector<1x256xi1>
    %243 = vector.broadcast %242 : vector<1x256xi1> to vector<8x256xi1>
    %244 = vector.broadcast %cst_73 : f32 to vector<8x256xf32>
    %245 = arith.select %243, %232, %244 : vector<8x256xi1>, vector<8x256xf32>
    %246 = vector.extract_strided_slice %147 {offsets = [0, 255], sizes = [8, 1], strides = [1, 1]} : vector<8x256xf32> to vector<8x1xf32>
    %247 = vector.extract_strided_slice %147 {offsets = [0, 0], sizes = [8, 255], strides = [1, 1]} : vector<8x256xf32> to vector<8x255xf32>
    %248 = tpu.concatenate %246, %247 in 1 : vector<8x1xf32>, vector<8x255xf32> -> vector<8x256xf32>
    %c-1_i32_74 = arith.constant -1 : i32
    %249 = vector.broadcast %c-1_i32_74 : i32 to vector<1x256xi32>
    %250 = arith.addi %3, %249 : vector<1x256xi32>
    %c0_i32_75 = arith.constant 0 : i32
    %251 = vector.broadcast %c0_i32_75 : i32 to vector<1x256xi32>
    %252 = arith.cmpi sge, %250, %251 : vector<1x256xi32>
    %c-1_i32_76 = arith.constant -1 : i32
    %253 = vector.broadcast %c-1_i32_76 : i32 to vector<1x256xi32>
    %254 = arith.addi %3, %253 : vector<1x256xi32>
    %c16_i32_77 = arith.constant 16 : i32
    %255 = vector.broadcast %c16_i32_77 : i32 to vector<1x256xi32>
    %256 = arith.cmpi slt, %254, %255 : vector<1x256xi32>
    %257 = arith.andi %252, %256 : vector<1x256xi1>
    %cst_78 = arith.constant 0.000000e+00 : f32
    %258 = vector.shape_cast %257 : vector<1x256xi1> to vector<1x256xi1>
    %259 = vector.broadcast %258 : vector<1x256xi1> to vector<8x256xi1>
    %260 = vector.broadcast %cst_78 : f32 to vector<8x256xf32>
    %261 = arith.select %259, %248, %260 : vector<8x256xi1>, vector<8x256xf32>
    %262 = vector.extract_strided_slice %147 {offsets = [0, 1], sizes = [8, 255], strides = [1, 1]} : vector<8x256xf32> to vector<8x255xf32>
    %263 = vector.extract_strided_slice %147 {offsets = [0, 0], sizes = [8, 1], strides = [1, 1]} : vector<8x256xf32> to vector<8x1xf32>
    %264 = tpu.concatenate %262, %263 in 1 : vector<8x255xf32>, vector<8x1xf32> -> vector<8x256xf32>
    %c1_i32_79 = arith.constant 1 : i32
    %265 = vector.broadcast %c1_i32_79 : i32 to vector<1x256xi32>
    %266 = arith.addi %3, %265 : vector<1x256xi32>
    %c0_i32_80 = arith.constant 0 : i32
    %267 = vector.broadcast %c0_i32_80 : i32 to vector<1x256xi32>
    %268 = arith.cmpi sge, %266, %267 : vector<1x256xi32>
    %c1_i32_81 = arith.constant 1 : i32
    %269 = vector.broadcast %c1_i32_81 : i32 to vector<1x256xi32>
    %270 = arith.addi %3, %269 : vector<1x256xi32>
    %c16_i32_82 = arith.constant 16 : i32
    %271 = vector.broadcast %c16_i32_82 : i32 to vector<1x256xi32>
    %272 = arith.cmpi slt, %270, %271 : vector<1x256xi32>
    %273 = arith.andi %268, %272 : vector<1x256xi1>
    %cst_83 = arith.constant 0.000000e+00 : f32
    %274 = vector.shape_cast %273 : vector<1x256xi1> to vector<1x256xi1>
    %275 = vector.broadcast %274 : vector<1x256xi1> to vector<8x256xi1>
    %276 = vector.broadcast %cst_83 : f32 to vector<8x256xf32>
    %277 = arith.select %275, %264, %276 : vector<8x256xi1>, vector<8x256xf32>
    %278 = vector.extract_strided_slice %147 {offsets = [0, 2], sizes = [8, 254], strides = [1, 1]} : vector<8x256xf32> to vector<8x254xf32>
    %279 = vector.extract_strided_slice %147 {offsets = [0, 0], sizes = [8, 2], strides = [1, 1]} : vector<8x256xf32> to vector<8x2xf32>
    %280 = tpu.concatenate %278, %279 in 1 : vector<8x254xf32>, vector<8x2xf32> -> vector<8x256xf32>
    %c2_i32_84 = arith.constant 2 : i32
    %281 = vector.broadcast %c2_i32_84 : i32 to vector<1x256xi32>
    %282 = arith.addi %3, %281 : vector<1x256xi32>
    %c0_i32_85 = arith.constant 0 : i32
    %283 = vector.broadcast %c0_i32_85 : i32 to vector<1x256xi32>
    %284 = arith.cmpi sge, %282, %283 : vector<1x256xi32>
    %c2_i32_86 = arith.constant 2 : i32
    %285 = vector.broadcast %c2_i32_86 : i32 to vector<1x256xi32>
    %286 = arith.addi %3, %285 : vector<1x256xi32>
    %c16_i32_87 = arith.constant 16 : i32
    %287 = vector.broadcast %c16_i32_87 : i32 to vector<1x256xi32>
    %288 = arith.cmpi slt, %286, %287 : vector<1x256xi32>
    %289 = arith.andi %284, %288 : vector<1x256xi1>
    %cst_88 = arith.constant 0.000000e+00 : f32
    %290 = vector.shape_cast %289 : vector<1x256xi1> to vector<1x256xi1>
    %291 = vector.broadcast %290 : vector<1x256xi1> to vector<8x256xi1>
    %292 = vector.broadcast %cst_88 : f32 to vector<8x256xf32>
    %293 = arith.select %291, %280, %292 : vector<8x256xi1>, vector<8x256xf32>
    %294 = vector.extract_strided_slice %147 {offsets = [0, 3], sizes = [8, 253], strides = [1, 1]} : vector<8x256xf32> to vector<8x253xf32>
    %295 = vector.extract_strided_slice %147 {offsets = [0, 0], sizes = [8, 3], strides = [1, 1]} : vector<8x256xf32> to vector<8x3xf32>
    %296 = tpu.concatenate %294, %295 in 1 : vector<8x253xf32>, vector<8x3xf32> -> vector<8x256xf32>
    %c3_i32_89 = arith.constant 3 : i32
    %297 = vector.broadcast %c3_i32_89 : i32 to vector<1x256xi32>
    %298 = arith.addi %3, %297 : vector<1x256xi32>
    %c0_i32_90 = arith.constant 0 : i32
    %299 = vector.broadcast %c0_i32_90 : i32 to vector<1x256xi32>
    %300 = arith.cmpi sge, %298, %299 : vector<1x256xi32>
    %c3_i32_91 = arith.constant 3 : i32
    %301 = vector.broadcast %c3_i32_91 : i32 to vector<1x256xi32>
    %302 = arith.addi %3, %301 : vector<1x256xi32>
    %c16_i32_92 = arith.constant 16 : i32
    %303 = vector.broadcast %c16_i32_92 : i32 to vector<1x256xi32>
    %304 = arith.cmpi slt, %302, %303 : vector<1x256xi32>
    %305 = arith.andi %300, %304 : vector<1x256xi1>
    %cst_93 = arith.constant 0.000000e+00 : f32
    %306 = vector.shape_cast %305 : vector<1x256xi1> to vector<1x256xi1>
    %307 = vector.broadcast %306 : vector<1x256xi1> to vector<8x256xi1>
    %308 = vector.broadcast %cst_93 : f32 to vector<8x256xf32>
    %309 = arith.select %307, %296, %308 : vector<8x256xi1>, vector<8x256xf32>
    %310 = vector.extract_strided_slice %147 {offsets = [0, 4], sizes = [8, 252], strides = [1, 1]} : vector<8x256xf32> to vector<8x252xf32>
    %311 = vector.extract_strided_slice %147 {offsets = [0, 0], sizes = [8, 4], strides = [1, 1]} : vector<8x256xf32> to vector<8x4xf32>
    %312 = tpu.concatenate %310, %311 in 1 : vector<8x252xf32>, vector<8x4xf32> -> vector<8x256xf32>
    %c4_i32 = arith.constant 4 : i32
    %313 = vector.broadcast %c4_i32 : i32 to vector<1x256xi32>
    %314 = arith.addi %3, %313 : vector<1x256xi32>
    %c0_i32_94 = arith.constant 0 : i32
    %315 = vector.broadcast %c0_i32_94 : i32 to vector<1x256xi32>
    %316 = arith.cmpi sge, %314, %315 : vector<1x256xi32>
    %c4_i32_95 = arith.constant 4 : i32
    %317 = vector.broadcast %c4_i32_95 : i32 to vector<1x256xi32>
    %318 = arith.addi %3, %317 : vector<1x256xi32>
    %c16_i32_96 = arith.constant 16 : i32
    %319 = vector.broadcast %c16_i32_96 : i32 to vector<1x256xi32>
    %320 = arith.cmpi slt, %318, %319 : vector<1x256xi32>
    %321 = arith.andi %316, %320 : vector<1x256xi1>
    %cst_97 = arith.constant 0.000000e+00 : f32
    %322 = vector.shape_cast %321 : vector<1x256xi1> to vector<1x256xi1>
    %323 = vector.broadcast %322 : vector<1x256xi1> to vector<8x256xi1>
    %324 = vector.broadcast %cst_97 : f32 to vector<8x256xf32>
    %325 = arith.select %323, %312, %324 : vector<8x256xi1>, vector<8x256xf32>
    %326 = vector.extract_strided_slice %147 {offsets = [0, 5], sizes = [8, 251], strides = [1, 1]} : vector<8x256xf32> to vector<8x251xf32>
    %327 = vector.extract_strided_slice %147 {offsets = [0, 0], sizes = [8, 5], strides = [1, 1]} : vector<8x256xf32> to vector<8x5xf32>
    %328 = tpu.concatenate %326, %327 in 1 : vector<8x251xf32>, vector<8x5xf32> -> vector<8x256xf32>
    %c5_i32 = arith.constant 5 : i32
    %329 = vector.broadcast %c5_i32 : i32 to vector<1x256xi32>
    %330 = arith.addi %3, %329 : vector<1x256xi32>
    %c0_i32_98 = arith.constant 0 : i32
    %331 = vector.broadcast %c0_i32_98 : i32 to vector<1x256xi32>
    %332 = arith.cmpi sge, %330, %331 : vector<1x256xi32>
    %c5_i32_99 = arith.constant 5 : i32
    %333 = vector.broadcast %c5_i32_99 : i32 to vector<1x256xi32>
    %334 = arith.addi %3, %333 : vector<1x256xi32>
    %c16_i32_100 = arith.constant 16 : i32
    %335 = vector.broadcast %c16_i32_100 : i32 to vector<1x256xi32>
    %336 = arith.cmpi slt, %334, %335 : vector<1x256xi32>
    %337 = arith.andi %332, %336 : vector<1x256xi1>
    %cst_101 = arith.constant 0.000000e+00 : f32
    %338 = vector.shape_cast %337 : vector<1x256xi1> to vector<1x256xi1>
    %339 = vector.broadcast %338 : vector<1x256xi1> to vector<8x256xi1>
    %340 = vector.broadcast %cst_101 : f32 to vector<8x256xf32>
    %341 = arith.select %339, %328, %340 : vector<8x256xi1>, vector<8x256xf32>
    %342 = vector.extract_strided_slice %147 {offsets = [0, 6], sizes = [8, 250], strides = [1, 1]} : vector<8x256xf32> to vector<8x250xf32>
    %343 = vector.extract_strided_slice %147 {offsets = [0, 0], sizes = [8, 6], strides = [1, 1]} : vector<8x256xf32> to vector<8x6xf32>
    %344 = tpu.concatenate %342, %343 in 1 : vector<8x250xf32>, vector<8x6xf32> -> vector<8x256xf32>
    %c6_i32 = arith.constant 6 : i32
    %345 = vector.broadcast %c6_i32 : i32 to vector<1x256xi32>
    %346 = arith.addi %3, %345 : vector<1x256xi32>
    %c0_i32_102 = arith.constant 0 : i32
    %347 = vector.broadcast %c0_i32_102 : i32 to vector<1x256xi32>
    %348 = arith.cmpi sge, %346, %347 : vector<1x256xi32>
    %c6_i32_103 = arith.constant 6 : i32
    %349 = vector.broadcast %c6_i32_103 : i32 to vector<1x256xi32>
    %350 = arith.addi %3, %349 : vector<1x256xi32>
    %c16_i32_104 = arith.constant 16 : i32
    %351 = vector.broadcast %c16_i32_104 : i32 to vector<1x256xi32>
    %352 = arith.cmpi slt, %350, %351 : vector<1x256xi32>
    %353 = arith.andi %348, %352 : vector<1x256xi1>
    %cst_105 = arith.constant 0.000000e+00 : f32
    %354 = vector.shape_cast %353 : vector<1x256xi1> to vector<1x256xi1>
    %355 = vector.broadcast %354 : vector<1x256xi1> to vector<8x256xi1>
    %356 = vector.broadcast %cst_105 : f32 to vector<8x256xf32>
    %357 = arith.select %355, %344, %356 : vector<8x256xi1>, vector<8x256xf32>
    %358 = vector.extract_strided_slice %147 {offsets = [0, 7], sizes = [8, 249], strides = [1, 1]} : vector<8x256xf32> to vector<8x249xf32>
    %359 = vector.extract_strided_slice %147 {offsets = [0, 0], sizes = [8, 7], strides = [1, 1]} : vector<8x256xf32> to vector<8x7xf32>
    %360 = tpu.concatenate %358, %359 in 1 : vector<8x249xf32>, vector<8x7xf32> -> vector<8x256xf32>
    %c7_i32 = arith.constant 7 : i32
    %361 = vector.broadcast %c7_i32 : i32 to vector<1x256xi32>
    %362 = arith.addi %3, %361 : vector<1x256xi32>
    %c0_i32_106 = arith.constant 0 : i32
    %363 = vector.broadcast %c0_i32_106 : i32 to vector<1x256xi32>
    %364 = arith.cmpi sge, %362, %363 : vector<1x256xi32>
    %c7_i32_107 = arith.constant 7 : i32
    %365 = vector.broadcast %c7_i32_107 : i32 to vector<1x256xi32>
    %366 = arith.addi %3, %365 : vector<1x256xi32>
    %c16_i32_108 = arith.constant 16 : i32
    %367 = vector.broadcast %c16_i32_108 : i32 to vector<1x256xi32>
    %368 = arith.cmpi slt, %366, %367 : vector<1x256xi32>
    %369 = arith.andi %364, %368 : vector<1x256xi1>
    %cst_109 = arith.constant 0.000000e+00 : f32
    %370 = vector.shape_cast %369 : vector<1x256xi1> to vector<1x256xi1>
    %371 = vector.broadcast %370 : vector<1x256xi1> to vector<8x256xi1>
    %372 = vector.broadcast %cst_109 : f32 to vector<8x256xf32>
    %373 = arith.select %371, %360, %372 : vector<8x256xi1>, vector<8x256xf32>
    %374 = tpu.concatenate %165, %181, %197, %213, %229, %245, %261, %147, %277, %293, %309, %325, %341, %357, %373 in 0 : vector<8x256xf32>, vector<8x256xf32>, vector<8x256xf32>, vector<8x256xf32>, vector<8x256xf32>, vector<8x256xf32>, vector<8x256xf32>, vector<8x256xf32>, vector<8x256xf32>, vector<8x256xf32>, vector<8x256xf32>, vector<8x256xf32>, vector<8x256xf32>, vector<8x256xf32>, vector<8x256xf32> -> vector<120x256xf32>
    %cst_110 = arith.constant dense<0.000000e+00> : vector<4x256xf32>
    %375 = tpu.matmul %148, %374, %cst_110 {dimension_numbers = #tpu.dot_dimension_numbers<[1], [0], [0], [1], [0, 0, 1, 1], [], []>} : vector<4x120xf32>, vector<120x256xf32>, vector<4x256xf32> -> vector<4x256xf32>
    %376 = vector.broadcast %149 : vector<4x1xf32> to vector<4x256xf32>
    %377 = arith.addf %375, %376 : vector<4x256xf32>
    %cst_111 = arith.constant dense<0xFF800000> : vector<256xf32>
    %378 = vector.multi_reduction <maximumf>, %377, %cst_111 [0] : vector<4x256xf32> to vector<256xf32>
    %379 = vector.shape_cast %378 : vector<256xf32> to vector<1x256xf32>
    %380 = vector.broadcast %379 : vector<1x256xf32> to vector<4x256xf32>
    %381 = arith.subf %377, %380 : vector<4x256xf32>
    %382 = math.exp %381 : vector<4x256xf32>
    %cst_112 = arith.constant dense<0.000000e+00> : vector<256xf32>
    %383 = vector.multi_reduction <add>, %382, %cst_112 [0] : vector<4x256xf32> to vector<256xf32>
    %384 = vector.shape_cast %383 : vector<256xf32> to vector<1x256xf32>
    %385 = math.log %384 : vector<1x256xf32>
    %386 = vector.broadcast %385 : vector<1x256xf32> to vector<4x256xf32>
    %387 = arith.subf %381, %386 : vector<4x256xf32>
    %c0_113 = arith.constant 0 : index
    %c0_114 = arith.constant 0 : index
    %388 = vector.load %arg8[%c0_113, %c0_114] : memref<4x256xf32, #tpu.memory_space<vmem>>, vector<4x256xf32>
    tpu.vector_store %arg8[%c0_113, %c0_114], %387 {strides = array<i32>} : memref<4x256xf32, #tpu.memory_space<vmem>>, vector<4x256xf32>,
    return
  }
  func.func @transform_0(%arg0: i32) -> (i32, i32) {
    %c0_i32 = arith.constant 0 : i32
    %c0_i32_0 = arith.constant 0 : i32
    return %c0_i32, %arg0 : i32, i32
  }
  func.func @transform_1(%arg0: i32) -> (i32, i32) {
    %c0_i32 = arith.constant 0 : i32
    %c0_i32_0 = arith.constant 0 : i32
    %c0_i32_1 = arith.constant 0 : i32
    return %c0_i32, %c0_i32_0 : i32, i32
  }
  func.func @transform_2(%arg0: i32) -> (i32, i32) {
    %c0_i32 = arith.constant 0 : i32
    %c0_i32_0 = arith.constant 0 : i32
    %c0_i32_1 = arith.constant 0 : i32
    return %c0_i32, %c0_i32_0 : i32, i32
  }
  func.func @transform_3(%arg0: i32) -> (i32, i32) {
    %c0_i32 = arith.constant 0 : i32
    %c0_i32_0 = arith.constant 0 : i32
    %c0_i32_1 = arith.constant 0 : i32
    return %c0_i32, %c0_i32_0 : i32, i32
  }
  func.func @transform_4(%arg0: i32) -> (i32, i32) {
    %c0_i32 = arith.constant 0 : i32
    %c0_i32_0 = arith.constant 0 : i32
    %c0_i32_1 = arith.constant 0 : i32
    return %c0_i32, %c0_i32_0 : i32, i32
  }
  func.func @transform_5(%arg0: i32) -> (i32, i32) {
    %c0_i32 = arith.constant 0 : i32
    %c0_i32_0 = arith.constant 0 : i32
    %c0_i32_1 = arith.constant 0 : i32
    return %c0_i32, %c0_i32_0 : i32, i32
  }
  func.func @transform_6(%arg0: i32) -> (i32, i32) {
    %c0_i32 = arith.constant 0 : i32
    %c0_i32_0 = arith.constant 0 : i32
    %c0_i32_1 = arith.constant 0 : i32
    return %c0_i32, %c0_i32_0 : i32, i32
  }
  func.func @transform_7(%arg0: i32) -> (i32, i32) {
    %c0_i32 = arith.constant 0 : i32
    %c0_i32_0 = arith.constant 0 : i32
    return %c0_i32, %arg0 : i32, i32
  }
}

</mosaic_0001>

<bundles_post_ra>
// kernel: tpu_custom_call.1
= control target key start
LH: loop header
LB: loop body
LE: loop exit
PB: predicated region body
PF: predicated region fallthrough
CT: control target
= control target key end

     0   :  { %12 = vsyncpa [#allocation3], 0  ;;  %s2238_s0 = inlined_call_operand.hbm [shape: f32[24,256], index: 0, kind: input, shape index: {}]   ;;  %s2239_s1 = inlined_call_operand.vmem [shape: f32[32,72], index: 1, kind: input, shape index: {}]   ;;  %s2240_s2 = inlined_call_operand.vmem [shape: f32[32,1], index: 2, kind: input, shape index: {}]   ;;  %s2241_s3 = inlined_call_operand.vmem [shape: f32[8,224], index: 3, kind: input, shape index: {}]   ;;  %s2242_s4 = inlined_call_operand.vmem [shape: f32[8,1], index: 4, kind: input, shape index: {}]   ;;  %s2243_s5 = inlined_call_operand.vmem [shape: f32[4,120], index: 5, kind: input, shape index: {}]   ;;  %s2244_s6 = inlined_call_operand.vmem [shape: f32[4,1], index: 6, kind: input, shape index: {}]   ;;  %s2245_s7 = inlined_call_operand.hbm [shape: f32[4,256], index: 7, kind: output, shape index: {}]  }
   0x1   :  { %13 = vsyncpa [#allocation4], 0  ;;  %s1627_s24 = smov [#allocation2]   ;;  %s1579_s28 = scalar_lea.hbm %s2238_s0, 768 }
   0x2   :  { %s19_s25 = sshll.u32 %s1627_s24, 4  ;;  %p1580_p0 = scmp.ne.s32.totalorder %s2238_s0, %s1579_s28  ;;  %s20_s25 = int_to_ptr.vmem [resolvable:$true] %s19_s25 }
   0x3   :  { %p1583_p1 = scmp.lt.u32.totalorder %s1579_s28, %s2238_s0 }
   0x5   :  { %p1585_p2 = pnand %p1583_p1, %p1580_p0 }
   0x7   :  { %1588 = shalt.err (!%p1585_p2)
}
   0x8   :  { %s1589_s10 = scalar_lea.vmem %s20_s25, 768  ;;  %p1594_p4 = scmp.lt.s32.totalorder %s20_s25, %s20_s25 }
   0x9   :  { %p1590_p3 = scmp.ne.s32.totalorder %s20_s25, %s1589_s10  ;;  %p1595_p5 = scmp.lt.s32.totalorder %s1589_s10, %s1589_s10 }
   0xb   :  { %p1596_p6 = por %p1595_p5, %p1594_p4 }
   0xd   :  { %p1597_p7 = pnand %p1596_p6, %p1590_p3 }
   0xf   :  { %1600 = shalt.err (!%p1597_p7)
}
  0x10   :  { %s1628_s11 = smov 256   ;;  %s1629_s12 = smov 16  }
  0x11   :  { %25 = dma.hbm_to_vmem [thread:$0]  %s2238_s0, 768, %s20_s25, [#allocation3], %s1628_s11, %s1628_s11, %s1629_s12  }
  0x12   :  { %1623 = dma.done.wait [#allocation3], 768  }
  0x13   :  { %1624 = vsyncadd [#allocation3], 4294966528  ;;  %v1700_v0 = vld [vmem:[#allocation2 + $0x8] sm:$0xff]  ;;  %v1702_v1 = vld [vmem:[#allocation2 + $0x18] sm:$0xff]  ;;  %s1630_s0 = smov 1   ;;  %s1631_s15 = smov 127   ;;  %v47_v19 = vlaneseq }
  0x14   :  { %v1704_v2 = vld [vmem:[#allocation2] sm:$0xff]  ;;  %v1359_v3 = vpack.i.bf16 %v1702_v1, %v1700_v0  ;;  %v1708_v4 = vld [vmem:[#allocation2 + $0x10] sm:$0xff]  ;;  %v1712_v6 = vld [vmem:[#allocation2 + $0x28] sm:$0xff]  ;;  %v1632_v13 = vmov 0.0   ;;  %v1633_v16 = vmov 0   ;;  %vm2255_vm0 = vcmask 7168  }
  0x15   :  { %v1710_v5 = vld [vmem:[#allocation2 + $0x20] sm:$0xff]  ;;  %v1364_v8 = vpack.i.bf16 %v1708_v4, %v1704_v2  ;;  %v1374_v9 = vpack.i.bf16 %v1700_v0, %v1704_v2  ;;  %v1206_v10 = vpack.c.bf16 %v1712_v6, %v1702_v1  ;;  %v1379_v12 = vpack.i.bf16 %v1702_v1, %v1708_v4  ;;  %255 = vmatprep.mubr.f32.mxu0 %v1632_v13  ;;  %v57_v15 = vld [vmem:[%s2240_s2 + $0x8] sm:$0xff]  ;;  %v58_v17 = vld [vmem:[%s2240_s2 + $0x10] sm:$0xff]  ;;  %s1636_s8 = smov 2   ;;  %s1637_s9 = smov 126  }
  0x16   :  { %v1369_v7 = vpack.i.bf16 %v1710_v5, %v1712_v6  ;;  %1360 = vrot.lane.b32.xlu0 %v1359_v3, %s1630_s0  ;;  %v1208_v11 = vpack.c.bf16 %v1710_v5, %v1708_v4  ;;  %v56_v14 = vld [vmem:[%s2240_s2] sm:$0xff]  ;;  %1384 = vset.pattern.permute.xlu1 %v1633_v16  ;;  %v59_v18 = vld [vmem:[%s2240_s2 + $0x18] sm:$0xff]  ;;  %v48_v20 = vand.u32 127, %v47_v19  ;;  %vm1634_vm5 = vmmov 1   ;;  %s1638_s10 = smov 125   ;;  %s1639_s17 = smov 6  }
  0x17   :  { %1385 = vset.pattern.permute.xlu0 %v1633_v16  ;;  %vm2248_vm7 = vcmask 1039360   ;;  %v52_v4 = vld [vmem:[%s2239_s1] sm:$0xff]  ;;  %vm178_vm13 = vcmask 588800   ;;  %s1640_s18 = smov 7   ;;  %s1641_s19 = smov 4  }
  0x18   :  { %1370 = vrot.lane.b32.xlu1 %v1369_v7, %s1630_s0  ;;  %v49_v21 = vadd.s32 128, %v48_v20  ;;  %v1750_v23 = vand.u32 15, %v48_v20  ;;  %v54_v7 = vld [vmem:[%s2239_s1 + $0x10] sm:$0xff]  ;;  %s1643_s20 = smov 123   ;;  %s1644_s21 = smov 124  }
  0x19   :  { %s1645_s22 = smov 121   ;;  %s1646_s23 = smov 122  }
  0x1a   :  { %1365 = vrot.lane.b32.xlu0 %v1364_v8, %s1630_s0  ;;  %v1748_v22 = vand.u32 15, %v49_v21  ;;  %v94_v26 = vadd.s32 4294967295, %v1750_v23  ;;  %v1796_v58 = vadd.s32 1, %v1750_v23  ;;  %v55_v8 = vld [vmem:[%s2239_s1 + $0x18] sm:$0xff]  ;;  %v2092_v1 = vadd.s32 3, %v1750_v23 }
  0x1c   :  { %1375 = vrot.lane.b32.xlu1 %v1374_v9, %s1631_s15  ;;  %v95_v25 = vadd.s32 4294967295, %v1748_v22  ;;  %vm96_vm2 = vcmp.ge.s32.totalorder %v94_v26, 0  ;;  %v1781_v53 = vadd.s32 1, %v1748_v22  ;;  %vm2246_vm11 = vcmp.lt.s32.totalorder %v1796_v58, 16 }
  0x1d   :  { %vm1769_vm4 = vmpackc.low %vm96_vm2, %vm96_vm2  ;;  %v922_v55 = vadd.s32 6, %v1748_v22 }
  0x1e   :  { %1380 = vrot.lane.b32.xlu0 %v1379_v12, %s1631_s15  ;;  %vm97_vm1 = vcmp.ge.s32.totalorder %v95_v25, 0  ;;  %vm1789_vm8 = vmpackc.low %vm1634_vm5, %vm96_vm2  ;;  %vm2247_vm9 = vcmp.lt.s32.totalorder %v1781_v53, 16 }
  0x1f   :  { %vm1759_vm3 = vmpackc.low %vm97_vm1, %vm97_vm1 }
  0x20   :  { %120 = vrot.lane.b32.xlu1 %v1710_v5, %s1631_s15  ;;  %vm1774_vm6 = vmpackc.low %vm1634_vm5, %vm97_vm1  ;;  %v53_v5 = vld [vmem:[%s2239_s1 + $0x8] sm:$0xff]  ;;  %s1635_s1 = smov 3  }
  0x21   :  { %vm1809_vm10 = vmpackc.low %vm2247_vm9, %vm2247_vm9 }
  0x22   :  { %122 = vrot.lane.b32.xlu0 %v1712_v6, %s1631_s15  ;;  %vm1822_vm12 = vmpackc.low %vm2246_vm11, %vm2246_vm11 }
  0x24   :  { %160 = vperm.xlu1 %1384, %v56_v14   ;;  %v1851_v14 = vadd.s32 4294967293, %v1748_v22 }
  0x26   :  { %165 = vperm.xlu0 %1385, %v57_v15   ;;  %v1854_v15 = vadd.s32 4294967294, %v1748_v22  ;;  %vm339_vm14 = vcmp.ge.s32.totalorder %v1851_v14, 0 }
  0x28   :  { %170 = vperm.xlu1 %1384, %v58_v17   ;;  %vm396_vm15 = vcmp.ge.s32.totalorder %v1854_v15, 0 }
  0x29   :  { %vm1866_vm1 = vmpackc.low %vm396_vm15, %vm339_vm14 }
  0x2c   :  { %175 = vperm.xlu1 %1384, %v59_v18  }
  0x88   :  { %v1361_v24 = vpop.permute.xlu0 %1360 }
  0x89   :  { %v1363_v30 = vunpack.i.h.bf16 %v1361_v24  ;;  %v1362_v32 = vunpack.i.l.bf16 %v1361_v24 }
  0x8a   :  { %v1371_v27 = vpop.permute.xlu1 %1370 }
  0x8b   :  { %v1373_v28 = vunpack.i.h.bf16 %v1371_v27  ;;  %v1372_v29 = vunpack.i.l.bf16 %v1371_v27 }
  0x8c   :  { %v1366_v31 = vpop.permute.xlu0 %1365 }
  0x8d   :  { %v1368_v33 = vunpack.i.h.bf16 %v1366_v31  ;;  %v1367_v34 = vunpack.i.l.bf16 %v1366_v31  ;;  %v84_v35 = vsel %vm2255_vm0, %v1373_v28, %v1372_v29  ;;  %v93_v42 = vsel %vm2255_vm0, %v1372_v29, %v1373_v28 }
  0x8e   :  { %v1376_v36 = vpop.permute.xlu1 %1375  ;;  %v1200_v43 = vpack.c.bf16 %v1700_v0, %v84_v35  ;;  %v1203_v54 = vpack.c.bf16 %v1704_v2, %v93_v42  ;;  %v1877_v31 = vadd.s32 4294967293, %v1750_v23 }
  0x8f   :  { %v82_v37 = vsel %vm2255_vm0, %v1367_v34, %v1362_v32  ;;  %v83_v38 = vsel %vm2255_vm0, %v1368_v33, %v1363_v30  ;;  %v91_v40 = vsel %vm2255_vm0, %v1362_v32, %v1367_v34  ;;  %v92_v41 = vsel %vm2255_vm0, %v1363_v30, %v1368_v33 }
  0x90   :  { %v1194_v44 = vpack.c.bf16 %v83_v38, %v82_v37  ;;  %v1197_v45 = vpack.c.bf16 %v92_v41, %v91_v40  ;;  %v1381_v47 = vpop.permute.xlu0 %1380  ;;  %v1378_v49 = vunpack.i.h.bf16 %v1376_v36  ;;  %v1377_v50 = vunpack.i.l.bf16 %v1376_v36 }
  0x91   :  { %v1383_v51 = vunpack.i.h.bf16 %v1381_v47  ;;  %v1382_v52 = vunpack.i.l.bf16 %v1381_v47  ;;  %v1880_v32 = vadd.s32 4294967294, %v1750_v23  ;;  %vm338_vm2 = vcmp.ge.s32.totalorder %v1877_v31, 0 }
  0x92   :  { %1196 = vmatprep.subr.msk.bf16.mxu0 %vm1759_vm3, %v1194_v44  ;;  %v137_v56 = vsel %vm2248_vm7, %v1378_v49, %v1377_v50  ;;  %v125_v59 = vsel %vm2248_vm7, %v1377_v50, %v1378_v49  ;;  %v121_v63 = vpop.permute.xlu1 %120  ;;  %v898_v49 = vadd.s32 5, %v1748_v22 }
  0x93   :  { %1199 = vmatpush1.bf16.msk.msra.mxu0 %vm1769_vm4, %v1197_v45  ;;  %v138_v57 = vsel %vm2248_vm7, %v1383_v51, %v1382_v52  ;;  %v126_v60 = vsel %vm2248_vm7, %v1382_v52, %v1383_v51  ;;  %vm395_vm5 = vcmp.ge.s32.totalorder %v1880_v32, 0 }
  0x94   :  { %1202 = vmatprep.subr.msk.bf16.mxu0 %vm1774_vm6, %v1200_v43  ;;  %v1210_v61 = vpack.c.bf16 %v138_v57, %v137_v56  ;;  %v123_v0 = vpop.permute.xlu0 %122  ;;  %v1213_v2 = vpack.c.bf16 %v126_v60, %v125_v59 }
  0x95   :  { %v139_v3 = vsel %vm2248_vm7, %v123_v0, %v121_v63  ;;  %v127_v6 = vsel %vm2248_vm7, %v121_v63, %v123_v0  ;;  %v290_v0 = vld [vmem:[%s2242_s4] sm:$0xff]  ;;  %vm1957_vm7 = vmpackc.low %vm339_vm14, %vm339_vm14  ;;  %vm2257_vm14 = vcmask 15360  }
  0x97   :  { %1205 = vmatpush1.bf16.msk.msra.mxu0 %vm1789_vm8, %v1203_v54 }
  0x98   :  { %1207 = vmatprep.subr.bf16.mxu0 %v1206_v10 }
  0x9b   :  { %1209 = vmatpush1.bf16.msra.mxu0 %v1208_v11 }
  0x9c   :  { %1212 = vmatprep.subr.msk.bf16.mxu0 %vm1809_vm10, %v1210_v61 }
  0x9f   :  { %1215 = vmatpush1.bf16.msk.msra.mxu0 %vm1822_vm12, %v1213_v2  ;;  %v289_v2 = vld [vmem:[%s2241_s3 + $0x8] sm:$0xff] }
  0xa0   :  { %1110 = vmatprep.subr.msk.mxu0 %vm2247_vm9, %v139_v3  ;;  %vm2256_vm9 = vcmask 23552  }
  0xa3   :  { %1111 = vmatpush1.msk.msra.mxu0 %vm2246_vm11, %v127_v6  ;;  %v161_v9 = vpop.permute.xlu1 %160  ;;  %vm620_vm11 = vcmask 785408  }
  0xa4   :  { %1112 = vmatmul.mubr.msk.f32.vlgmr.msra.gmra.mrb[0].mxu0 %vm178_vm13, %v52_v4  ;;  %1164 = vmatprep.mubr.msk.f32.mxu1 %vm620_vm11, %v289_v2  ;;  %vm1966_vm11 = vmpackc.low %vm338_vm2, %vm338_vm2 }
  0xa5   :  { %261 = vmatprep.mubr.f32.mxu0 %v1632_v13  ;;  %v166_v17 = vpop.permute.xlu0 %165 }
  0xa7   :  { %v171_v25 = vpop.permute.xlu1 %170 }
  0xa8   :  { %1113 = vmatmul.mubr.msk.f32.gmra.mrb[2].mxu0 %vm178_vm13, %v53_v5 }
  0xa9   :  { %267 = vmatprep.mubr.f32.mxu0 %v1632_v13 }
  0xab   :  { %v176_v41 = vpop.permute.xlu1 %175 }
  0xac   :  { %1114 = vmatmul.mubr.msk.f32.gmra.mrb[4].mxu0 %vm178_vm13, %v54_v7 }
  0xad   :  { %273 = vmatprep.mubr.f32.mxu0 %v1632_v13 }
  0xb0   :  { %1115 = vmatmul.mubr.msk.f32.gmra.mrb[6].mxu0 %vm178_vm13, %v55_v8  ;;  %vm1902_vm13 = vmpackc.low %vm395_vm5, %vm338_vm2 }
  0xb1   :  { %1032 = vmatprep.mubr.f32.mxu0 %v1632_v13  ;;  %vm1989_vm2 = vmpackc.low %vm396_vm15, %vm396_vm15  ;;  %vm2282_vm15 = vcmask 1039360  }
 0x177   :  { %v257_v10 = vpop.f32.mrb[0].mxu0 }
 0x178   :  { %v258_v11 = vadd.f32 %v257_v10, %v161_v9  ;;  %v259_v12 = vpop.f32.mrb[1].mxu0 }
 0x179   :  { %v260_v16 = vadd.f32 %v259_v12, %v161_v9 }
 0x17a   :  { %v1856_v18 = vmax.f32 %v258_v11, 0.0 }
 0x17b   :  { %v1858_v19 = vmax.f32 %v260_v16, 0.0  ;;  %v263_v20 = vpop.f32.mrb[2].mxu0 }
 0x17c   :  { %v264_v13 = vadd.f32 %v263_v20, %v166_v17  ;;  %v265_v21 = vpop.f32.mrb[3].mxu0 }
 0x17d   :  { %v266_v26 = vadd.f32 %v265_v21, %v166_v17  ;;  %v1446_v27 = vpack.i.bf16 %v1858_v19, %v1856_v18 }
 0x17e   :  { %v1872_v28 = vmax.f32 %v264_v13, 0.0 }
 0x17f   :  { %v1874_v29 = vmax.f32 %v266_v26, 0.0  ;;  %v269_v30 = vpop.f32.mrb[4].mxu0 }
 0x180   :  { %v270_v33 = vadd.f32 %v269_v30, %v171_v25  ;;  %v271_v34 = vpop.f32.mrb[5].mxu0  ;;  %v1386_v35 = vpack.i.bf16 %v1872_v28, %v1856_v18  ;;  %v1254_v50 = vpack.c.bf16 %v1872_v28, %v1856_v18 }
 0x181   :  { %v272_v36 = vadd.f32 %v271_v34, %v171_v25  ;;  %v1391_v37 = vpack.i.bf16 %v1874_v29, %v1858_v19  ;;  %v1451_v40 = vpack.i.bf16 %v1874_v29, %v1872_v28  ;;  %v1252_v44 = vpack.c.bf16 %v1874_v29, %v1858_v19 }
 0x182   :  { %v1886_v38 = vmax.f32 %v270_v33, 0.0  ;;  %1387 = vrot.lane.b32.xlu1 %v1386_v35, %s1635_s1 }
 0x183   :  { %v1891_v42 = vmax.f32 %v272_v36, 0.0  ;;  %v275_v43 = vpop.f32.mrb[6].mxu0  ;;  %1392 = vrot.lane.b32.xlu0 %v1391_v37, %s1635_s1 }
 0x184   :  { %v276_v45 = vadd.f32 %v275_v43, %v176_v41  ;;  %v277_v47 = vpop.f32.mrb[7].mxu0 }
 0x185   :  { %v278_v51 = vadd.f32 %v277_v47, %v176_v41  ;;  %v1456_v52 = vpack.i.bf16 %v1891_v42, %v1886_v38 }
 0x186   :  { %v1910_v54 = vmax.f32 %v276_v45, 0.0 }
 0x187   :  { %v1912_v56 = vmax.f32 %v278_v51, 0.0 }
 0x188   :  { %v1396_v57 = vpack.i.bf16 %v1910_v54, %v1886_v38  ;;  %v1258_v59 = vpack.c.bf16 %v1910_v54, %v1886_v38 }
 0x189   :  { %v1401_v60 = vpack.i.bf16 %v1912_v56, %v1891_v42  ;;  %v1466_v61 = vpack.i.bf16 %v1912_v56, %v1910_v54  ;;  %v1256_v63 = vpack.c.bf16 %v1912_v56, %v1891_v42  ;;  %v2052_v56 = vadd.s32 2, %v1750_v23 }
 0x18a   :  { %1397 = vrot.lane.b32.xlu1 %v1396_v57, %s1635_s1 }
 0x18b   :  { %1402 = vrot.lane.b32.xlu0 %v1401_v60, %s1635_s1 }
 0x18e   :  { %1412 = vrot.lane.b32.xlu1 %v1386_v35, %s1636_s8 }
 0x18f   :  { %1407 = vrot.lane.b32.xlu0 %v1391_v37, %s1636_s8 }
 0x192   :  { %1417 = vrot.lane.b32.xlu1 %v1396_v57, %s1636_s8 }
 0x193   :  { %1422 = vrot.lane.b32.xlu0 %v1401_v60, %s1636_s8 }
 0x196   :  { %1432 = vrot.lane.b32.xlu1 %v1386_v35, %s1630_s0 }
 0x197   :  { %1427 = vrot.lane.b32.xlu0 %v1391_v37, %s1630_s0 }
 0x19a   :  { %1442 = vrot.lane.b32.xlu1 %v1396_v57, %s1630_s0 }
 0x19b   :  { %1437 = vrot.lane.b32.xlu0 %v1401_v60, %s1630_s0 }
 0x19e   :  { %1452 = vrot.lane.b32.xlu1 %v1451_v40, %s1631_s15 }
 0x19f   :  { %1447 = vrot.lane.b32.xlu0 %v1446_v27, %s1631_s15 }
 0x1a2   :  { %1467 = vrot.lane.b32.xlu1 %v1466_v61, %s1631_s15 }
 0x1a3   :  { %1457 = vrot.lane.b32.xlu0 %v1456_v52, %s1631_s15 }
 0x1a6   :  { %1472 = vrot.lane.b32.xlu1 %v1451_v40, %s1637_s9 }
 0x1a7   :  { %1462 = vrot.lane.b32.xlu0 %v1446_v27, %s1637_s9 }
 0x1aa   :  { %1487 = vrot.lane.b32.xlu1 %v1466_v61, %s1637_s9 }
 0x1ab   :  { %1477 = vrot.lane.b32.xlu0 %v1456_v52, %s1637_s9 }
 0x1ae   :  { %1492 = vrot.lane.b32.xlu1 %v1451_v40, %s1638_s10 }
 0x1af   :  { %1482 = vrot.lane.b32.xlu0 %v1446_v27, %s1638_s10 }
 0x1b2   :  { %1502 = vrot.lane.b32.xlu1 %v1466_v61, %s1638_s10 }
 0x1b3   :  { %1497 = vrot.lane.b32.xlu0 %v1456_v52, %s1638_s10 }
 0x1b7   :  { %617 = vperm.xlu0 %1385, %v290_v0  }
 0x1f4   :  { %v1388_v3 = vpop.permute.xlu1 %1387 }
 0x1f5   :  { %v1390_v6 = vunpack.i.h.bf16 %v1388_v3  ;;  %v1389_v4 = vunpack.i.l.bf16 %v1388_v3  ;;  %v1393_v5 = vpop.permute.xlu0 %1392 }
 0x1f6   :  { %v1395_v7 = vunpack.i.h.bf16 %v1393_v5  ;;  %v1394_v8 = vunpack.i.l.bf16 %v1393_v5 }
 0x1f8   :  { %v320_v9 = vsel %vm2256_vm9, %v1389_v4, %v1394_v8  ;;  %v321_v10 = vsel %vm2256_vm9, %v1390_v6, %v1395_v7  ;;  %v332_v12 = vsel %vm2256_vm9, %v1394_v8, %v1389_v4  ;;  %v333_v16 = vsel %vm2256_vm9, %v1395_v7, %v1390_v6 }
 0x1f9   :  { %v1216_v17 = vpack.c.bf16 %v321_v10, %v320_v9  ;;  %v1219_v20 = vpack.c.bf16 %v333_v16, %v332_v12 }
 0x1fb   :  { %1218 = vmatprep.subr.msk.bf16.mxu1 %vm1957_vm7, %v1216_v17 }
 0x1fc   :  { %v1398_v14 = vpop.permute.xlu1 %1397  ;;  %1221 = vmatpush1.bf16.msk.msra.mxu1 %vm1966_vm11, %v1219_v20 }
 0x1fd   :  { %v1400_v21 = vunpack.i.h.bf16 %v1398_v14  ;;  %v1399_v25 = vunpack.i.l.bf16 %v1398_v14  ;;  %v1403_v26 = vpop.permute.xlu0 %1402 }
 0x1fe   :  { %v1405_v27 = vunpack.i.h.bf16 %v1403_v26  ;;  %v1404_v30 = vunpack.i.l.bf16 %v1403_v26 }
 0x200   :  { %v322_v31 = vsel %vm2256_vm9, %v1399_v25, %v1404_v30  ;;  %v323_v33 = vsel %vm2256_vm9, %v1400_v21, %v1405_v27  ;;  %v334_v34 = vsel %vm2256_vm9, %v1404_v30, %v1399_v25  ;;  %v335_v35 = vsel %vm2256_vm9, %v1405_v27, %v1400_v21  ;;  %v1413_v36 = vpop.permute.xlu1 %1412 }
 0x201   :  { %v1222_v37 = vpack.c.bf16 %v323_v33, %v322_v31  ;;  %v1225_v40 = vpack.c.bf16 %v335_v35, %v334_v34  ;;  %v1415_v41 = vunpack.i.h.bf16 %v1413_v36  ;;  %v1414_v43 = vunpack.i.l.bf16 %v1413_v36  ;;  %v1408_v45 = vpop.permute.xlu0 %1407 }
 0x202   :  { %v1410_v47 = vunpack.i.h.bf16 %v1408_v45  ;;  %v1409_v51 = vunpack.i.l.bf16 %v1408_v45 }
 0x203   :  { %1224 = vmatprep.subr.msk.bf16.mxu1 %vm1957_vm7, %v1222_v37  ;;  %vm1996_vm7 = vmpackc.low %vm395_vm5, %vm395_vm5 }
 0x204   :  { %v377_v52 = vsel %vm2257_vm14, %v1414_v43, %v1409_v51  ;;  %v378_v57 = vsel %vm2257_vm14, %v1415_v41, %v1410_v47  ;;  %v389_v60 = vsel %vm2257_vm14, %v1409_v51, %v1414_v43  ;;  %v390_v61 = vsel %vm2257_vm14, %v1410_v47, %v1415_v41  ;;  %v1418_v0 = vpop.permute.xlu1 %1417  ;;  %1227 = vmatpush1.bf16.msk.msra.mxu1 %vm1966_vm11, %v1225_v40  ;;  %vm2283_vm5 = vmmov %vm2282_vm15 }
 0x205   :  { %v1228_v3 = vpack.c.bf16 %v378_v57, %v377_v52  ;;  %v1231_v6 = vpack.c.bf16 %v390_v61, %v389_v60  ;;  %v1420_v4 = vunpack.i.h.bf16 %v1418_v0  ;;  %v1419_v5 = vunpack.i.l.bf16 %v1418_v0  ;;  %v1423_v7 = vpop.permute.xlu0 %1422 }
 0x206   :  { %v1425_v9 = vunpack.i.h.bf16 %v1423_v7  ;;  %v1424_v10 = vunpack.i.l.bf16 %v1423_v7 }
 0x207   :  { %1230 = vmatprep.subr.msk.bf16.mxu1 %vm1989_vm2, %v1228_v3 }
 0x208   :  { %v379_v15 = vsel %vm2257_vm14, %v1419_v5, %v1424_v10  ;;  %v380_v11 = vsel %vm2257_vm14, %v1420_v4, %v1425_v9  ;;  %v391_v12 = vsel %vm2257_vm14, %v1424_v10, %v1419_v5  ;;  %v392_v16 = vsel %vm2257_vm14, %v1425_v9, %v1420_v4  ;;  %v1433_v17 = vpop.permute.xlu1 %1432  ;;  %1233 = vmatpush1.bf16.msk.msra.mxu1 %vm1996_vm7, %v1231_v6 }
 0x209   :  { %v1234_v32 = vpack.c.bf16 %v380_v11, %v379_v15  ;;  %v1237_v20 = vpack.c.bf16 %v392_v16, %v391_v12  ;;  %v1435_v13 = vunpack.i.h.bf16 %v1433_v17  ;;  %v1434_v14 = vunpack.i.l.bf16 %v1433_v17  ;;  %v1428_v21 = vpop.permute.xlu0 %1427 }
 0x20a   :  { %v1430_v25 = vunpack.i.h.bf16 %v1428_v21  ;;  %v1429_v26 = vunpack.i.l.bf16 %v1428_v21 }
 0x20b   :  { %1236 = vmatprep.subr.msk.bf16.mxu1 %vm1989_vm2, %v1234_v32 }
 0x20c   :  { %v433_v27 = vsel %vm2255_vm0, %v1434_v14, %v1429_v26  ;;  %v434_v30 = vsel %vm2255_vm0, %v1435_v13, %v1430_v25  ;;  %v445_v31 = vsel %vm2255_vm0, %v1429_v26, %v1434_v14  ;;  %v446_v33 = vsel %vm2255_vm0, %v1430_v25, %v1435_v13  ;;  %v1443_v34 = vpop.permute.xlu1 %1442  ;;  %1239 = vmatpush1.bf16.msk.msra.mxu1 %vm1996_vm7, %v1237_v20 }
 0x20d   :  { %v1240_v35 = vpack.c.bf16 %v434_v30, %v433_v27  ;;  %v1243_v36 = vpack.c.bf16 %v446_v33, %v445_v31  ;;  %v1445_v37 = vunpack.i.h.bf16 %v1443_v34  ;;  %v1444_v40 = vunpack.i.l.bf16 %v1443_v34  ;;  %v1438_v41 = vpop.permute.xlu0 %1437 }
 0x20e   :  { %v1440_v43 = vunpack.i.h.bf16 %v1438_v41  ;;  %v1439_v45 = vunpack.i.l.bf16 %v1438_v41  ;;  %vm2254_vm7 = vcmask 1031168  }
 0x20f   :  { %1242 = vmatprep.subr.msk.bf16.mxu1 %vm1759_vm3, %v1240_v35  ;;  %v2065_v35 = vadd.s32 3, %v1748_v22 }
 0x210   :  { %v435_v47 = vsel %vm2255_vm0, %v1444_v40, %v1439_v45  ;;  %v436_v51 = vsel %vm2255_vm0, %v1445_v37, %v1440_v43  ;;  %v447_v52 = vsel %vm2255_vm0, %v1439_v45, %v1444_v40  ;;  %v448_v57 = vsel %vm2255_vm0, %v1440_v43, %v1445_v37  ;;  %v1453_v60 = vpop.permute.xlu1 %1452  ;;  %1245 = vmatpush1.bf16.msk.msra.mxu1 %vm1769_vm4, %v1243_v36 }
 0x211   :  { %v1246_v61 = vpack.c.bf16 %v436_v51, %v435_v47  ;;  %v1249_v0 = vpack.c.bf16 %v448_v57, %v447_v52  ;;  %v1448_v2 = vpop.permute.xlu0 %1447  ;;  %v1455_v3 = vunpack.i.h.bf16 %v1453_v60  ;;  %v1454_v6 = vunpack.i.l.bf16 %v1453_v60 }
 0x212   :  { %v1450_v4 = vunpack.i.h.bf16 %v1448_v2  ;;  %v1449_v5 = vunpack.i.l.bf16 %v1448_v2 }
 0x213   :  { %1248 = vmatprep.subr.msk.bf16.mxu1 %vm1759_vm3, %v1246_v61  ;;  %v490_v9 = vsel %vm2282_vm15, %v1455_v3, %v1454_v6  ;;  %vm2284_vm3 = vmmov %vm2283_vm5 }
 0x214   :  { %v1468_v7 = vpop.permute.xlu1 %1467  ;;  %1251 = vmatpush1.bf16.msk.msra.mxu1 %vm1769_vm4, %v1249_v0  ;;  %v489_v10 = vsel %vm2283_vm5, %v1450_v4, %v1449_v5  ;;  %v474_v46 = vsel %vm2284_vm3, %v1454_v6, %v1455_v3  ;;  %vm2285_vm4 = vmmov %vm2284_vm3 }
 0x215   :  { %v1458_v8 = vpop.permute.xlu0 %1457  ;;  %1253 = vmatprep.subr.bf16.mxu1 %v1252_v44  ;;  %v1470_v15 = vunpack.i.h.bf16 %v1468_v7  ;;  %v1469_v11 = vunpack.i.l.bf16 %v1468_v7  ;;  %v473_v19 = vsel %vm2285_vm4, %v1449_v5, %v1450_v4  ;;  %v1260_v29 = vpack.c.bf16 %v490_v9, %v489_v10  ;;  %vm2286_vm11 = vmmov %vm2284_vm3 }
 0x216   :  { %v1460_v12 = vunpack.i.h.bf16 %v1458_v8  ;;  %v1459_v16 = vunpack.i.l.bf16 %v1458_v8  ;;  %v2042_v44 = vadd.s32 2, %v1748_v22  ;;  %vm2287_vm2 = vmmov %vm2284_vm3  ;;  %vm2252_vm4 = vcmp.lt.s32.totalorder %v2052_v56, 16 }
 0x217   :  { %v492_v18 = vsel %vm2286_vm11, %v1470_v15, %v1469_v11  ;;  %vm2288_vm15 = vmmov %vm2287_vm2 }
 0x218   :  { %v1473_v17 = vpop.permute.xlu1 %1472  ;;  %1255 = vmatpush1.bf16.msra.mxu1 %v1254_v50  ;;  %v491_v28 = vsel %vm2287_vm2, %v1460_v12, %v1459_v16  ;;  %v476_v21 = vsel %vm2288_vm15, %v1469_v11, %v1470_v15  ;;  %vm2253_vm5 = vcmp.lt.s32.totalorder %v2042_v44, 16  ;;  %vm2289_vm3 = vmmov %vm2287_vm2  ;;  %vm2250_vm15 = vcmp.lt.s32.totalorder %v2065_v35, 16 }
 0x219   :  { %v1463_v39 = vpop.permute.xlu0 %1462  ;;  %1257 = vmatprep.subr.bf16.mxu1 %v1256_v63  ;;  %v1475_v32 = vunpack.i.h.bf16 %v1473_v17  ;;  %v1474_v20 = vunpack.i.l.bf16 %v1473_v17  ;;  %v1263_v63 = vpack.c.bf16 %v474_v46, %v473_v19  ;;  %v475_v25 = vsel %vm2289_vm3, %v1459_v16, %v1460_v12  ;;  %vm2072_vm11 = vmpackc.low %vm2253_vm5, %vm2253_vm5 }
 0x21a   :  { %v1465_v13 = vunpack.i.h.bf16 %v1463_v39  ;;  %v1464_v14 = vunpack.i.l.bf16 %v1463_v39  ;;  %v1266_v26 = vpack.c.bf16 %v492_v18, %v491_v28  ;;  %v1269_v36 = vpack.c.bf16 %v476_v21, %v475_v25  ;;  %vm2085_vm2 = vmpackc.low %vm2252_vm4, %vm2252_vm4 }
 0x21b   :  { %v535_v27 = vsel %vm2254_vm7, %v1475_v32, %v1474_v20  ;;  %v519_v37 = vsel %vm2254_vm7, %v1474_v20, %v1475_v32  ;;  %vm2249_vm3 = vcmp.lt.s32.totalorder %v2092_v1, 16  ;;  %vm778_vm4 = vcmask 31744  }
 0x21c   :  { %v1488_v50 = vpop.permute.xlu1 %1487  ;;  %1259 = vmatpush1.bf16.msra.mxu1 %v1258_v59  ;;  %v534_v38 = vsel %vm2254_vm7, %v1465_v13, %v1464_v14  ;;  %v518_v40 = vsel %vm2254_vm7, %v1464_v14, %v1465_v13  ;;  %v288_v14 = vld [vmem:[%s2241_s3] sm:$0xff]  ;;  %s1642_s3 = smov 5   ;;  %vm754_vm5 = vcmask 39936  }
 0x21d   :  { %v1478_v42 = vpop.permute.xlu0 %1477  ;;  %1262 = vmatprep.subr.msk.bf16.mxu1 %vm1809_vm10, %v1260_v29  ;;  %v1490_v54 = vunpack.i.h.bf16 %v1488_v50  ;;  %v1489_v59 = vunpack.i.l.bf16 %v1488_v50  ;;  %v1272_v41 = vpack.c.bf16 %v535_v27, %v534_v38  ;;  %v1275_v2 = vpack.c.bf16 %v519_v37, %v518_v40  ;;  %v698_v38 = vld [vmem:[%s2244_s6] sm:$0xf] }
 0x21e   :  { %v1480_v30 = vunpack.i.h.bf16 %v1478_v42  ;;  %v1479_v31 = vunpack.i.l.bf16 %v1478_v42  ;;  %v759_v40 = vadd.s32 4294967291, %v1750_v23 }
 0x21f   :  { %v537_v52 = vsel %vm2254_vm7, %v1490_v54, %v1489_v59  ;;  %v521_v3 = vsel %vm2254_vm7, %v1489_v59, %v1490_v54  ;;  %v712_v54 = vadd.s32 4294967289, %v1748_v22  ;;  %v736_v59 = vadd.s32 4294967290, %v1748_v22 }
 0x220   :  { %v1493_v33 = vpop.permute.xlu1 %1492  ;;  %1265 = vmatpush1.bf16.msk.msra.mxu1 %vm1822_vm12, %v1263_v63  ;;  %v536_v57 = vsel %vm2254_vm7, %v1480_v30, %v1479_v31  ;;  %v520_v6 = vsel %vm2254_vm7, %v1479_v31, %v1480_v30  ;;  %v711_v30 = vadd.s32 4294967289, %v1750_v23  ;;  %v735_v31 = vadd.s32 4294967290, %v1750_v23 }
 0x221   :  { %v1483_v34 = vpop.permute.xlu0 %1482  ;;  %1268 = vmatprep.subr.msk.bf16.mxu1 %vm1809_vm10, %v1266_v26  ;;  %v1495_v62 = vunpack.i.h.bf16 %v1493_v33  ;;  %v1494_v45 = vunpack.i.l.bf16 %v1493_v33  ;;  %vm2251_vm10 = vcmask 1022976   ;;  %v1278_v4 = vpack.c.bf16 %v537_v52, %v536_v57 }
 0x222   :  { %v1485_v47 = vunpack.i.h.bf16 %v1483_v34  ;;  %v1484_v51 = vunpack.i.l.bf16 %v1483_v34  ;;  %v1281_v11 = vpack.c.bf16 %v521_v3, %v520_v6  ;;  %v760_v33 = vadd.s32 4294967291, %v1748_v22 }
 0x223   :  { %v592_v5 = vsel %vm2251_vm10, %v1495_v62, %v1494_v45  ;;  %v576_v12 = vsel %vm2251_vm10, %v1494_v45, %v1495_v62  ;;  %v784_v34 = vadd.s32 4294967292, %v1748_v22  ;;  %vm761_vm7 = vcmp.ge.s32.totalorder %v759_v40, 0 }
 0x224   :  { %1271 = vmatpush1.bf16.msk.msra.mxu1 %vm1822_vm12, %v1269_v36  ;;  %v1503_v60 = vpop.permute.xlu1 %1502  ;;  %v591_v7 = vsel %vm2251_vm10, %v1485_v47, %v1484_v51  ;;  %vm1285_vm12 = vmpackc.low %vm2250_vm15, %vm2250_vm15  ;;  %v575_v16 = vsel %vm2251_vm10, %v1484_v51, %v1485_v47  ;;  %vm713_vm15 = vcmp.ge.s32.totalorder %v711_v30, 0 }
 0x225   :  { %v1498_v61 = vpop.permute.xlu0 %1497  ;;  %1274 = vmatprep.subr.msk.bf16.mxu1 %vm2072_vm11, %v1272_v41  ;;  %v1505_v8 = vunpack.i.h.bf16 %v1503_v60  ;;  %v1504_v9 = vunpack.i.l.bf16 %v1503_v60  ;;  %v1284_v17 = vpack.c.bf16 %v592_v5, %v591_v7  ;;  %v1287_v19 = vpack.c.bf16 %v576_v12, %v575_v16 }
 0x226   :  { %v1500_v10 = vunpack.i.h.bf16 %v1498_v61  ;;  %v1499_v15 = vunpack.i.l.bf16 %v1498_v61  ;;  %v783_v41 = vadd.s32 4294967292, %v1750_v23 }
 0x227   :  { %v594_v39 = vsel %vm2251_vm10, %v1505_v8, %v1504_v9  ;;  %v578_v29 = vsel %vm2251_vm10, %v1504_v9, %v1505_v8 }
 0x228   :  { %1277 = vmatpush1.bf16.msk.msra.mxu1 %vm2085_vm2, %v1275_v2  ;;  %v593_v46 = vsel %vm2251_vm10, %v1500_v10, %v1499_v15  ;;  %v577_v32 = vsel %vm2251_vm10, %v1499_v15, %v1500_v10  ;;  %vm737_vm10 = vcmp.ge.s32.totalorder %v735_v31, 0  ;;  %vm785_vm0 = vcmp.ge.s32.totalorder %v783_v41, 0 }
 0x229   :  { %1280 = vmatprep.subr.msk.bf16.mxu1 %vm2072_vm11, %v1278_v4  ;;  %vm1288_vm11 = vmpackc.low %vm2249_vm3, %vm2249_vm3  ;;  %v1290_v20 = vpack.c.bf16 %v594_v39, %v593_v46  ;;  %v1293_v13 = vpack.c.bf16 %v578_v29, %v577_v32  ;;  %vm738_vm3 = vcmp.ge.s32.totalorder %v736_v59, 0 }
 0x22a   :  { %vm1300_vm14 = vmpackc.low %vm737_vm10, %vm713_vm15 }
 0x22b   :  { %vm1306_vm10 = vmpackc.low %vm785_vm0, %vm761_vm7  ;;  %vm2300_vm0 = vcmask 7168  }
 0x22c   :  { %1283 = vmatpush1.bf16.msk.msra.mxu1 %vm2085_vm2, %v1281_v11  ;;  %vm730_vm2 = vcmask 48128   ;;  %vm2301_vm7 = vmmov %vm2300_vm0 }
 0x22d   :  { %1286 = vmatprep.subr.msk.bf16.mxu1 %vm1285_vm12, %v1284_v17 }
 0x230   :  { %1289 = vmatpush1.bf16.msk.msra.mxu1 %vm1288_vm11, %v1287_v19 }
 0x231   :  { %1292 = vmatprep.subr.msk.bf16.mxu1 %vm1285_vm12, %v1290_v20  ;;  %vm706_vm12 = vcmask 56320  }
 0x234   :  { %1295 = vmatpush1.bf16.msk.msra.mxu1 %vm1288_vm11, %v1293_v13  ;;  %vm714_vm11 = vcmp.ge.s32.totalorder %v712_v54, 0 }
 0x235   :  { %vm1297_vm9 = vmpackc.low %vm738_vm3, %vm714_vm11  ;;  %vm2294_vm3 = vcmp.ge.s32.totalorder %v760_v33, 0  ;;  %vm867_vm11 = vcmask 1014784  }
 0x236   :  { %v618_v18 = vpop.permute.xlu0 %617 }
 0x237   :  { %689 = vmatmul.mubr.f32.vlgmr.msra.gmra.mrb[0].mxu1 %v288_v14 }
 0x30a   :  { %v690_v28 = vpop.f32.mrb[0].mxu1 }
 0x30b   :  { %v691_v50 = vadd.f32 %v690_v28, %v618_v18  ;;  %v692_v42 = vpop.f32.mrb[1].mxu1 }
 0x30c   :  { %v693_v63 = vadd.f32 %v692_v42, %v618_v18 }
 0x30d   :  { %v2119_v21 = vmax.f32 %v691_v50, 0.0 }
 0x30e   :  { %v2121_v25 = vmax.f32 %v693_v63, 0.0  ;;  %v873_v63 = vadd.s32 4, %v1750_v23 }
 0x310   :  { %v1511_v26 = vpack.i.bf16 %v2119_v21, %v2121_v25  ;;  %v1541_v27 = vpack.i.bf16 %v2121_v25, %v2119_v21  ;;  %vm877_vm15 = vcmp.lt.s32.totalorder %v873_v63, 16 }
 0x312   :  { %1512 = vrot.lane.b32.xlu0 %v1511_v26, %s1639_s17  ;;  %1507 = vrot.lane.b32.xlu1 %v1511_v26, %s1640_s18 }
 0x316   :  { %1522 = vrot.lane.b32.xlu0 %v1511_v26, %s1641_s19  ;;  %1517 = vrot.lane.b32.xlu1 %v1511_v26, %s1642_s3 }
 0x31a   :  { %1532 = vrot.lane.b32.xlu0 %v1511_v26, %s1636_s8  ;;  %1527 = vrot.lane.b32.xlu1 %v1511_v26, %s1635_s1 }
 0x31e   :  { %1542 = vrot.lane.b32.xlu0 %v1541_v27, %s1631_s15  ;;  %1537 = vrot.lane.b32.xlu1 %v1511_v26, %s1630_s0 }
 0x322   :  { %1552 = vrot.lane.b32.xlu0 %v1541_v27, %s1638_s10  ;;  %1547 = vrot.lane.b32.xlu1 %v1541_v27, %s1637_s9 }
 0x326   :  { %1562 = vrot.lane.b32.xlu0 %v1541_v27, %s1643_s20  ;;  %1557 = vrot.lane.b32.xlu1 %v1541_v27, %s1644_s21 }
 0x32a   :  { %935 = vrot.lane.b32.xlu0 %v2119_v21, %s1645_s22  ;;  %1567 = vrot.lane.b32.xlu1 %v1541_v27, %s1646_s23 }
 0x32e   :  { %961 = vperm.xlu0 %1385, %v698_v38   ;;  %937 = vrot.lane.b32.xlu1 %v2121_v25, %s1645_s22 }
 0x384   :  { %v1513_v36 = vpop.permute.xlu0 %1512  ;;  %v1508_v37 = vpop.permute.xlu1 %1507 }
 0x385   :  { %v1515_v43 = vunpack.i.h.bf16 %v1513_v36  ;;  %v1514_v62 = vunpack.i.l.bf16 %v1513_v36  ;;  %v1510_v45 = vunpack.i.h.bf16 %v1508_v37  ;;  %v1509_v47 = vunpack.i.l.bf16 %v1508_v37 }
 0x386   :  { %v874_v37 = vadd.s32 4, %v1748_v22 }
 0x387   :  { %v731_v51 = vsel %vm730_vm2, %v1515_v43, %v1514_v62  ;;  %v734_v52 = vsel %vm730_vm2, %v1514_v62, %v1515_v43  ;;  %v707_v57 = vsel %vm706_vm12, %v1510_v45, %v1509_v47  ;;  %v710_v60 = vsel %vm706_vm12, %v1509_v47, %v1510_v45 }
 0x388   :  { %v1296_v61 = vpack.c.bf16 %v731_v51, %v707_v57  ;;  %v1299_v0 = vpack.c.bf16 %v734_v52, %v710_v60  ;;  %v1523_v2 = vpop.permute.xlu0 %1522  ;;  %v1518_v3 = vpop.permute.xlu1 %1517  ;;  %vm2295_vm2 = vcmp.ge.s32.totalorder %v784_v34, 0 }
 0x389   :  { %v1525_v6 = vunpack.i.h.bf16 %v1523_v2  ;;  %v1524_v4 = vunpack.i.l.bf16 %v1523_v2  ;;  %v1520_v5 = vunpack.i.h.bf16 %v1518_v3  ;;  %v1519_v7 = vunpack.i.l.bf16 %v1518_v3  ;;  %vm1303_vm12 = vmpackc.low %vm2295_vm2, %vm2294_vm3 }
 0x38a   :  { %1298 = vmatprep.subr.msk.bf16.mxu0 %vm1297_vm9, %v1296_v61  ;;  %vm2296_vm9 = vcmask 15360   ;;  %vm2304_vm2 = vcmask 1031168   ;;  %v921_v61 = vadd.s32 6, %v1750_v23 }
 0x38b   :  { %v779_v8 = vsel %vm778_vm4, %v1525_v6, %v1524_v4  ;;  %v782_v9 = vsel %vm778_vm4, %v1524_v4, %v1525_v6  ;;  %v755_v10 = vsel %vm754_vm5, %v1520_v5, %v1519_v7  ;;  %v758_v15 = vsel %vm754_vm5, %v1519_v7, %v1520_v5  ;;  %1301 = vmatpush1.bf16.msk.msra.mxu0 %vm1300_vm14, %v1299_v0  ;;  %vm2297_vm4 = vmmov %vm2296_vm9 }
 0x38c   :  { %v1302_v11 = vpack.c.bf16 %v779_v8, %v755_v10  ;;  %v1305_v12 = vpack.c.bf16 %v782_v9, %v758_v15  ;;  %v1533_v16 = vpop.permute.xlu0 %1532  ;;  %v1528_v17 = vpop.permute.xlu1 %1527  ;;  %vm2298_vm14 = vcmask 23552   ;;  %v946_v8 = vadd.s32 7, %v1748_v22 }
 0x38d   :  { %v1535_v39 = vunpack.i.h.bf16 %v1533_v16  ;;  %v1534_v46 = vunpack.i.l.bf16 %v1533_v16  ;;  %v1530_v19 = vunpack.i.h.bf16 %v1528_v17  ;;  %v1529_v29 = vunpack.i.l.bf16 %v1528_v17  ;;  %vm2299_vm5 = vmmov %vm2298_vm14 }
 0x38e   :  { %1304 = vmatprep.subr.msk.bf16.mxu0 %vm1303_vm12, %v1302_v11  ;;  %vm2305_vm12 = vmmov %vm2304_vm2  ;;  %v945_v17 = vadd.s32 7, %v1750_v23 }
 0x38f   :  { %v813_v32 = vsel %vm2296_vm9, %v1535_v39, %v1534_v46  ;;  %v816_v20 = vsel %vm2297_vm4, %v1534_v46, %v1535_v39  ;;  %v802_v13 = vsel %vm2298_vm14, %v1530_v19, %v1529_v29  ;;  %v805_v14 = vsel %vm2299_vm5, %v1529_v29, %v1530_v19  ;;  %1307 = vmatpush1.bf16.msk.msra.mxu0 %vm1306_vm10, %v1305_v12  ;;  %v697_v19 = vld [vmem:[%s2243_s5] sm:$0xf]  ;;  %s1647_s5 = smov [#allocation5]  }
 0x390   :  { %v1308_v18 = vpack.c.bf16 %v813_v32, %v802_v13  ;;  %v1311_v28 = vpack.c.bf16 %v816_v20, %v805_v14  ;;  %v1543_v50 = vpop.permute.xlu0 %1542  ;;  %v1538_v42 = vpop.permute.xlu1 %1537  ;;  %vm2306_vm10 = vcmp.lt.s32.totalorder %v1781_v53, 16  ;;  %vm2307_vm9 = vcmp.lt.s32.totalorder %v2042_v44, 16  ;;  %s1091_s15 = sshll.u32 %s1647_s5, 4  ;;  %s1092_s15 = int_to_ptr.vmem [resolvable:$true] %s1091_s15 }
 0x391   :  { %v1540_v26 = vunpack.i.h.bf16 %v1538_v42  ;;  %v1539_v27 = vunpack.i.l.bf16 %v1538_v42  ;;  %v1545_v38 = vunpack.i.h.bf16 %v1543_v50  ;;  %v1544_v54 = vunpack.i.l.bf16 %v1543_v50  ;;  %vm1321_vm4 = vmpackc.low %vm2307_vm9, %vm2306_vm10  ;;  %s1601_s25 = scalar_lea.vmem %s1092_s15, 128  ;;  %p1606_p9 = scmp.lt.s32.totalorder %s1092_s15, %s1092_s15 }
 0x392   :  { %1310 = vmatprep.subr.msk.bf16.mxu0 %vm1866_vm1, %v1308_v18  ;;  %vm891_vm1 = vcmask 1006592   ;;  %vm2309_vm14 = vcmp.lt.s32.totalorder %v2052_v56, 16  ;;  %v897_v44 = vadd.s32 5, %v1750_v23  ;;  %vm2315_vm10 = vcmp.lt.s32.totalorder %v2092_v1, 16  ;;  %p1602_p8 = scmp.ne.s32.totalorder %s1092_s15, %s1601_s25  ;;  %p1607_p10 = scmp.lt.s32.totalorder %s1601_s25, %s1601_s25 }
 0x393   :  { %v824_v59 = vsel %vm2300_vm0, %v1540_v26, %v1539_v27  ;;  %v827_v30 = vsel %vm2301_vm7, %v1539_v27, %v1540_v26  ;;  %1313 = vmatpush1.bf16.msk.msra.mxu0 %vm1902_vm13, %v1311_v28  ;;  %vm2302_vm13 = vcmask 1039360   ;;  %vm878_vm0 = vcmp.lt.s32.totalorder %v874_v37, 16  ;;  %vm1330_vm9 = vmpackc.low %vm877_vm15, %vm2315_vm10 }
 0x394   :  { %v1314_v31 = vpack.c.bf16 %v2121_v25, %v824_v59  ;;  %v1317_v33 = vpack.c.bf16 %v2119_v21, %v827_v30  ;;  %v1553_v34 = vpop.permute.xlu0 %1552  ;;  %v1548_v36 = vpop.permute.xlu1 %1547  ;;  %v834_v25 = vsel %vm2302_vm13, %v1544_v54, %v1545_v38  ;;  %vm2303_vm3 = vmmov %vm2302_vm13  ;;  %vm915_vm13 = vcmask 998400   ;;  %p1608_p11 = por %p1607_p10, %p1606_p9 }
 0x395   :  { %v1550_v24 = vunpack.i.h.bf16 %v1548_v36  ;;  %v1549_v40 = vunpack.i.l.bf16 %v1548_v36  ;;  %v1555_v41 = vunpack.i.h.bf16 %v1553_v34  ;;  %v1554_v43 = vunpack.i.l.bf16 %v1553_v34 }
 0x396   :  { %1316 = vmatprep.subr.msk.bf16.mxu0 %vm1774_vm6, %v1314_v31  ;;  %v838_v21 = vsel %vm2303_vm3, %v1545_v38, %v1544_v54  ;;  %vm2308_vm6 = vcmp.lt.s32.totalorder %v1796_v58, 16  ;;  %vm902_vm3 = vcmp.lt.s32.totalorder %v898_v49, 16  ;;  %p1609_p12 = pnand %p1608_p11, %p1602_p8 }
 0x397   :  { %v845_v62 = vsel %vm2304_vm2, %v1549_v40, %v1550_v24  ;;  %v849_v45 = vsel %vm2305_vm12, %v1550_v24, %v1549_v40  ;;  %1319 = vmatpush1.bf16.msk.msra.mxu0 %vm1789_vm8, %v1317_v33  ;;  %vm2193_vm5 = vmpackc.low %vm2309_vm14, %vm2308_vm6  ;;  %vm2312_vm8 = vcmask 1022976   ;;  %vm2314_vm2 = vcmp.lt.s32.totalorder %v2065_v35, 16 }
 0x398   :  { %v1320_v47 = vpack.c.bf16 %v849_v45, %v838_v21  ;;  %v1323_v51 = vpack.c.bf16 %v845_v62, %v834_v25  ;;  %v1563_v52 = vpop.permute.xlu0 %1562  ;;  %v1558_v57 = vpop.permute.xlu1 %1557  ;;  %v856_v58 = vsel %vm2312_vm8, %v1554_v43, %v1555_v41  ;;  %vm2313_vm7 = vmmov %vm2312_vm8  ;;  %vm925_vm6 = vcmp.lt.s32.totalorder %v921_v61, 16 }
 0x399   :  { %v1560_v60 = vunpack.i.h.bf16 %v1558_v57  ;;  %v1559_v53 = vunpack.i.l.bf16 %v1558_v57  ;;  %v860_v56 = vsel %vm2313_vm7, %v1555_v41, %v1554_v43  ;;  %v1565_v0 = vunpack.i.h.bf16 %v1563_v52  ;;  %vm1327_vm12 = vmpackc.low %vm878_vm0, %vm2314_vm2 }
 0x39a   :  { %1322 = vmatprep.subr.msk.bf16.mxu0 %vm1321_vm4, %v1320_v47  ;;  %v1564_v2 = vunpack.i.l.bf16 %v1563_v52  ;;  %vm926_vm4 = vcmp.lt.s32.totalorder %v922_v55, 16  ;;  %vm939_vm14 = vcmask 990208   ;;  %vm950_vm0 = vcmp.lt.s32.totalorder %v946_v8, 16 }
 0x39b   :  { %v868_v3 = vsel %vm867_vm11, %v1559_v53, %v1560_v60  ;;  %v872_v6 = vsel %vm867_vm11, %v1560_v60, %v1559_v53  ;;  %1325 = vmatpush1.bf16.msk.msra.mxu0 %vm2193_vm5, %v1323_v51  ;;  %vm901_vm11 = vcmp.lt.s32.totalorder %v897_v44, 16  ;;  %vm1333_vm15 = vmpackc.low %vm926_vm4, %vm902_vm3  ;;  %vm964_vm8 = vcmask 982016  }
 0x39c   :  { %v1326_v4 = vpack.c.bf16 %v872_v6, %v860_v56  ;;  %v1329_v5 = vpack.c.bf16 %v868_v3, %v856_v58  ;;  %v1568_v7 = vpop.permute.xlu1 %1567  ;;  %v892_v15 = vsel %vm891_vm1, %v1564_v2, %v1565_v0  ;;  %v896_v35 = vsel %vm891_vm1, %v1565_v0, %v1564_v2  ;;  %vm1336_vm5 = vmpackc.low %vm925_vm6, %vm901_vm11  ;;  %v936_v39 = vpop.permute.xlu0 %935 }
 0x39d   :  { %v1570_v9 = vunpack.i.h.bf16 %v1568_v7  ;;  %v1569_v10 = vunpack.i.l.bf16 %v1568_v7  ;;  %vm949_vm1 = vcmp.lt.s32.totalorder %v945_v17, 16  ;;  %vm1039_vm7 = vcmask 1043456  }
 0x39e   :  { %1328 = vmatprep.subr.msk.bf16.mxu0 %vm1327_vm12, %v1326_v4 }
 0x39f   :  { %v916_v11 = vsel %vm915_vm13, %v1569_v10, %v1570_v9  ;;  %v920_v1 = vsel %vm915_vm13, %v1570_v9, %v1569_v10  ;;  %1331 = vmatpush1.bf16.msk.msra.mxu0 %vm1330_vm9, %v1329_v5 }
 0x3a0   :  { %v1332_v12 = vpack.c.bf16 %v920_v1, %v896_v35  ;;  %v1335_v16 = vpack.c.bf16 %v916_v11, %v892_v15  ;;  %v938_v22 = vpop.permute.xlu1 %937 }
 0x3a1   :  { %v944_v46 = vsel %vm939_vm14, %v938_v22, %v936_v39  ;;  %v940_v29 = vsel %vm939_vm14, %v936_v39, %v938_v22 }
 0x3a2   :  { %1334 = vmatprep.subr.msk.bf16.mxu0 %vm1333_vm15, %v1332_v12 }
 0x3a3   :  { %1337 = vmatpush1.bf16.msk.msra.mxu0 %vm1336_vm5, %v1335_v16 }
 0x3a4   :  { %1191 = vmatprep.subr.msk.mxu0 %vm950_vm0, %v944_v46 }
 0x3a7   :  { %1192 = vmatpush1.msk.msra.mxu0 %vm949_vm1, %v940_v29 }
 0x3a8   :  { %1193 = vmatmul.mubr.msk.f32.vlgmr.msra.gmra.mrb[8].mxu0 %vm964_vm8, %v697_v19 }
 0x3ad   :  { %v962_v32 = vpop.permute.xlu0 %961 }
 0x47b   :  { %v1034_v20 = vpop.f32.mrb[8].mxu0 }
 0x47c   :  { %v1035_v13 = vadd.f32 %v1034_v20, %v962_v32  ;;  %v1036_v23 = vpop.f32.mrb[9].mxu0 }
 0x47d   :  { %v1037_v14 = vadd.f32 %v1036_v23, %v962_v32 }
 0x47e   :  { %v1040_v18 = vsel %vm1039_vm7, %v1035_v13, -inf }
 0x47f   :  { %v1041_v28 = vrot.slane %v1040_v18, 4  ;;  %v1047_v50 = vsel %vm1039_vm7, %v1037_v14, -inf }
 0x480   :  { %v1048_v42 = vrot.slane %v1047_v50, 4 }
 0x481   :  { %v1042_v63 = vmax.f32 %v1040_v18, %v1041_v28 }
 0x482   :  { %v1049_v26 = vmax.f32 %v1047_v50, %v1048_v42 }
 0x483   :  { %v1043_v27 = vrot.slane %v1042_v63, 2 }
 0x484   :  { %v1050_v38 = vrot.slane %v1049_v26, 2 }
 0x485   :  { %v1044_v54 = vmax.f32 %v1042_v63, %v1043_v27 }
 0x486   :  { %v1051_v59 = vmax.f32 %v1049_v26, %v1050_v38 }
 0x487   :  { %v1045_v30 = vrot.slane %v1044_v54, 1 }
 0x488   :  { %v1052_v31 = vrot.slane %v1051_v59, 1 }
 0x489   :  { %v1046_v33 = vmax.f32 %v1044_v54, %v1045_v30 }
 0x48a   :  { %v1053_v34 = vmax.f32 %v1051_v59, %v1052_v31 }
 0x48b   :  { %v1054_v36 = vsub.f32 %v1035_v13, %v1046_v33 }
 0x48c   :  { %v1055_v37 = vsub.f32 %v1037_v14, %v1053_v34 }
 0x48d   :  { %v1056_v24 = vmul.f32 1.442695, %v1054_v36 }
 0x48e   :  { %v1058_v40 = vmul.f32 1.442695, %v1055_v37 }
 0x48f   :  { %1571 = vpow2.f32 %v1056_v24 }
 0x490   :  { %1573 = vpow2.f32 %v1058_v40 }
 0x499   :  { %v1572_v41 = vpop.eup %1571 }
 0x49a   :  { %v1574_v43 = vpop.eup %1573  ;;  %v1060_v49 = vsel %vm1039_vm7, %v1572_v41, 0.0 }
 0x49b   :  { %v1061_v25 = vrot.slane %v1060_v49, 4  ;;  %v1067_v21 = vsel %vm1039_vm7, %v1574_v43, 0.0 }
 0x49c   :  { %v1068_v62 = vrot.slane %v1067_v21, 4 }
 0x49d   :  { %v1062_v45 = vadd.f32 %v1061_v25, %v1060_v49 }
 0x49e   :  { %v1069_v48 = vadd.f32 %v1068_v62, %v1067_v21 }
 0x49f   :  { %v1063_v47 = vrot.slane %v1062_v45, 2 }
 0x4a0   :  { %v1070_v51 = vrot.slane %v1069_v48, 2 }
 0x4a1   :  { %v1064_v52 = vadd.f32 %v1063_v47, %v1062_v45 }
 0x4a2   :  { %v1071_v57 = vadd.f32 %v1070_v51, %v1069_v48 }
 0x4a3   :  { %v1065_v55 = vrot.slane %v1064_v52, 1 }
 0x4a4   :  { %v1072_v60 = vrot.slane %v1071_v57, 1 }
 0x4a5   :  { %v1066_v53 = vadd.f32 %v1065_v55, %v1064_v52 }
 0x4a6   :  { %v1073_v44 = vadd.f32 %v1072_v60, %v1071_v57 }
 0x4a7   :  { %1575 = vlog2.f32 %v1066_v53 }
 0x4a8   :  { %1577 = vlog2.f32 %v1073_v44 }
 0x4b1   :  { %v1576_v61 = vpop.eup %1575 }
 0x4b2   :  { %v1578_v58 = vpop.eup %1577  ;;  %v1075_v56 = vmul.f32 0.6931472, %v1576_v61 }
 0x4b3   :  { %v1077_v0 = vmul.f32 0.6931472, %v1578_v58 }
 0x4b4   :  { %v1078_v2 = vsub.f32 %v1054_v36, %v1075_v56 }
 0x4b5   :  { %v1079_v3 = vsub.f32 %v1055_v37, %v1077_v0 }
 0x4b7   :  { %v1082_v6 = vcombine.low %v1078_v2, %v1079_v3 }
 0x4b9   :  { %1084 = vst [vmem:[#allocation5] sm:$0xff] %v1082_v6 }
 0x4ba   :  { %1612 = shalt.err (!%p1609_p12)
}
 0x4bb   :  { %s1613_s28 = scalar_lea.hbm %s2245_s7, 128 }
 0x4bc   :  { %p1614_p13 = scmp.ne.s32.totalorder %s2245_s7, %s1613_s28  ;;  %p1617_p0 = scmp.lt.u32.totalorder %s1613_s28, %s2245_s7 }
 0x4be   :  { %p1619_p1 = pnand %p1617_p0, %p1614_p13 }
 0x4c0   :  { %1622 = shalt.err (!%p1619_p1)
}
 0x4c1   :  { %1094 = dma.vmem_to_hbm [thread:$0]  %s1092_s15, 128, %s2245_s7, [#allocation4]  }
 0x4c2   :  { %1625 = dma.done.wait [#allocation4], 128  }
 0x4c3   :  { %1626 = vsyncadd [#allocation4], 4294967168 }
 0x4c4   :  { %1098 = vsyncpa [#allocation3], 1 }
 0x4c5   :  { %1099 = vsyncpa [#allocation4], 1 }

</bundles_post_ra>
